<compile_context>
chip_gen: v7x
topology: tpu7x:2x2x1
jax: 0.10.0
libtpu: 0.0.40
codegen_flags: <defaults>
</compile_context>

<pallas_src>
import jax
import jax.numpy as jnp
from jax.experimental import pallas as pl
from jax.experimental.pallas import tpu as pltpu


# ---------------------------------------------------------------------------
# Fused LeNet forward kernel
# ---------------------------------------------------------------------------

def lenet_kernel(x_ref, w1_ref, w2_ref, w3_ref, w4_ref, w5_ref, b_ref, out_ref):
    f32, bf16 = jnp.float32, jnp.bfloat16
    nt = x_ref.shape[0]                       # batch tile

    x = x_ref[...]                            # (nt, 28, 32) f32, cols 28..31 = 0
    b = b_ref[...]                            # (5, 128) f32
    b1, b2, b3, b4, b5 = b[0], b[1], b[2], b[3], b[4]

    # ----- conv1 as an im2col MXU matmul (K = kh*32 + iw) --------------------
    patch1 = jnp.concatenate([x[:, kh:kh + 24, :] for kh in range(5)], axis=-1)
    patch1 = patch1.reshape(nt * 24, 5 * 32)                       # (24nt, 160)
    acc1 = jnp.dot(patch1, w1_ref[...],
                   preferred_element_type=f32)                     # (24nt, 256)
    # lanes [0:128]: even output cols (owe*8 + c); lanes [128:256]: odd cols.

    # 2x2 max-pool (commutes with the monotone bias+ReLU epilogue).
    acc1 = acc1.reshape(nt, 12, 2, 256)
    acc1 = jnp.maximum(acc1[:, :, 0, :], acc1[:, :, 1, :])         # H pool
    acc1 = jnp.maximum(acc1[:, :, :128], acc1[:, :, 128:])         # W pool
    p1 = jnp.maximum(acc1 + b1, 0.0)          # (nt, 12, 128), lane = owe*8 + cin

    # ----- conv2 as one 2-D dot (K = kh*128 + iw*8 + cin) --------------------
    patch2 = jnp.concatenate([p1[:, kh:kh + 8, :] for kh in range(5)], axis=-1)
    patch2 = patch2.reshape(nt * 8, 5 * 128).astype(bf16)          # (8nt, 640)
    acc2 = jnp.dot(patch2, w2_ref[...],
                   preferred_element_type=f32)                     # (8nt, 128)
    # lane = ow2*16 + c2.

    acc2 = acc2.reshape(nt, 4, 2, 128)
    acc2 = jnp.maximum(acc2[:, :, 0, :], acc2[:, :, 1, :])         # H pool
    r2 = jnp.maximum(acc2 + b2, 0.0)                               # (nt, 4, 128)

    # W pool over ow2 pairs + flatten to k = oh'*64 + ow'*16 + c2 (lane concat;
    # w3 rows were permuted at prep time to match this order).
    cols = [jnp.maximum(r2[:, :, 32 * a:32 * a + 16],
                        r2[:, :, 32 * a + 16:32 * a + 32]) for a in range(4)]
    flat64 = jnp.concatenate(cols, axis=-1)                        # (nt, 4, 64)
    flat = jnp.concatenate([flat64[:, a, :] for a in range(4)],
                           axis=-1)                                # (nt, 256)

    # ----- fc1 -> relu -> fc2 -> relu -> fc3 ---------------------------------
    h1 = jnp.maximum(jnp.dot(flat.astype(bf16), w3_ref[...],
                             preferred_element_type=f32) + b3, 0.0)
    h2 = jnp.maximum(jnp.dot(h1.astype(bf16), w4_ref[...],
                             preferred_element_type=f32) + b4, 0.0)
    out = jnp.dot(h2.astype(bf16), w5_ref[...],
                  preferred_element_type=f32) + b5                 # (nt, 128)
    out_ref[...] = out.reshape(out_ref.shape).astype(out_ref.dtype)


# ---------------------------------------------------------------------------
# Wrapper
# ---------------------------------------------------------------------------

def lenet_forward(params, x_nchw, *, n_tile=1):
    N = x_nchw.shape[0]
    assert N % n_tile == 0
    x = x_nchw.reshape(N, 28, 28).astype(jnp.float32)
    x = jnp.pad(x, ((0, 0), (0, 0), (0, 4)))                       # (N, 28, 32)

    w1, w2, w3, w4, w5 = (params['w1'], params['w2'], params['w3'],
                          params['w4'], params['w5'])
    bias = params['bias']

    def const_spec(arr):                      # weights: same block every step
        return pl.BlockSpec(arr.shape, lambda i: (0, 0))

    flops = 2 * N * (24 * 160 * 256 + 8 * 640 * 128
                     + 256 * 128 + 128 * 128 + 128 * 128)
    bytes_accessed = (sum(int(a.size) * a.dtype.itemsize
                          for a in (w1, w2, w3, w4, w5, bias))
                      + int(x.size) * 4 + N * 128 * 4)

    out = pl.pallas_call(
        lenet_kernel,
        out_shape=jax.ShapeDtypeStruct((N, 1, 128), jnp.float32),
        grid=(N // n_tile,),
        in_specs=[
            pl.BlockSpec((n_tile, 28, 32), lambda i: (i, 0, 0)),
            const_spec(w1), const_spec(w2), const_spec(w3),
            const_spec(w4), const_spec(w5), const_spec(bias),
        ],
        out_specs=pl.BlockSpec((n_tile, 1, 128), lambda i: (i, 0, 0)),
        compiler_params=pltpu.CompilerParams(
            dimension_semantics=("parallel",)),
        cost_estimate=pl.CostEstimate(flops=flops, transcendentals=0,
                                      bytes_accessed=bytes_accessed),
    )(x, w1, w2, w3, w4, w5, bias)
    return out[:, 0, :10]


# ---------------------------------------------------------------------------
# Parameters: PyTorch layout -> packed, banded kernel layout (done once)
# ---------------------------------------------------------------------------

def conv_band_weights(w_t, *, in_w, in_w_pad, out_w, out_w_pad, stride, offset,
                      cin_pad, cout_pad):
    """Banded im2col weight matrix.

    Row index = kh*(in_w_pad*cin_pad) + iw*cin_pad + cin
    Col index = ow*cout_pad + cout
    Value     = w_t[cout, cin, kh, iw - (stride*ow + offset)] if the tap lies
                inside the 5x5 window and all indices are in range, else 0.
    """
    cout_n, cin_n, kh_n, kw_n = w_t.shape
    kh = jnp.arange(kh_n).reshape(kh_n, 1, 1, 1, 1)
    iw = jnp.arange(in_w_pad).reshape(1, in_w_pad, 1, 1, 1)
    ci = jnp.arange(cin_pad).reshape(1, 1, cin_pad, 1, 1)
    ow = jnp.arange(out_w_pad).reshape(1, 1, 1, out_w_pad, 1)
    co = jnp.arange(cout_pad).reshape(1, 1, 1, 1, cout_pad)
    kw = iw - (stride * ow + offset)
    valid = ((kw >= 0) & (kw < kw_n) & (iw < in_w) & (ow < out_w)
             & (ci < cin_n) & (co < cout_n))
    vals = w_t[jnp.minimum(co, cout_n - 1),
               jnp.minimum(ci, cin_n - 1),
               kh,
               jnp.clip(kw, 0, kw_n - 1)]
    vals = jnp.where(valid, vals, 0.0)
    return vals.reshape(kh_n * in_w_pad * cin_pad, out_w_pad * cout_pad)


def init_torch_params(key):
    """Deterministic LeNet parameters in PyTorch layout / default init."""
    ks = jax.random.split(key, 10)

    def u(k, shape, fan_in):
        bound = 1.0 / jnp.sqrt(jnp.float32(fan_in))
        return jax.random.uniform(k, shape, jnp.float32, -bound, bound)

    return {
        'w1': u(ks[0], (6, 1, 5, 5), 25), 'b1': u(ks[1], (6,), 25),
        'w2': u(ks[2], (16, 6, 5, 5), 150), 'b2': u(ks[3], (16,), 150),
        'w3': u(ks[4], (120, 256), 256), 'b3': u(ks[5], (120,), 256),
        'w4': u(ks[6], (84, 120), 120), 'b4': u(ks[7], (84,), 120),
        'w5': u(ks[8], (10, 84), 84), 'b5': u(ks[9], (10,), 84),
    }


def prepare_params(tp):
    """Rearrange / pack PyTorch-layout weights for the fused kernel."""
    f32, bf16 = jnp.float32, jnp.bfloat16

    # conv1: banded (160, 256); lanes [0:128] even output cols, [128:256] odd.
    w1_e = conv_band_weights(tp['w1'], in_w=28, in_w_pad=32, out_w=12,
                             out_w_pad=16, stride=2, offset=0,
                             cin_pad=1, cout_pad=8)
    w1_o = conv_band_weights(tp['w1'], in_w=28, in_w_pad=32, out_w=12,
                             out_w_pad=16, stride=2, offset=1,
                             cin_pad=1, cout_pad=8)
    w1 = jnp.concatenate([w1_e, w1_o], axis=1).astype(f32)        # (160, 256)

    # conv2: banded (640, 128); row = kh*128 + iw*8 + cin, col = ow2*16 + c2.
    w2 = conv_band_weights(tp['w2'], in_w=12, in_w_pad=16, out_w=8,
                           out_w_pad=8, stride=1, offset=0,
                           cin_pad=8, cout_pad=16).astype(bf16)    # (640, 128)

    # fc1: kernel flatten index k = oh*64 + ow*16 + c2  <->  torch j = c2*16 + oh*4 + ow.
    w3 = jnp.transpose(tp['w3'].reshape(120, 16, 4, 4), (2, 3, 1, 0))  # (4,4,16,120)
    w3 = (jnp.zeros((256, 128), f32).at[:, :120]
          .set(w3.reshape(256, 120)).astype(bf16))

    w4 = jnp.zeros((128, 128), f32).at[:120, :84].set(tp['w4'].T).astype(bf16)
    w5 = jnp.zeros((128, 128), f32).at[:84, :10].set(tp['w5'].T).astype(bf16)

    b1 = (jnp.zeros((16, 8), f32).at[:12, :6]
          .set(jnp.broadcast_to(tp['b1'], (12, 6))).reshape(128))
    b2 = jnp.broadcast_to(tp['b2'], (8, 16)).reshape(128)
    bias = (jnp.zeros((5, 128), f32)
            .at[0].set(b1).at[1].set(b2)
            .at[2, :120].set(tp['b3']).at[3, :84].set(tp['b4'])
            .at[4, :10].set(tp['b5']))

    return {'w1': w1, 'w2': w2, 'w3': w3, 'w4': w4, 'w5': w5, 'bias': bias}


# ---------------------------------------------------------------------------
# Plain-JAX reference (mirrors the PyTorch module) for a correctness check
# ---------------------------------------------------------------------------

def lenet_reference(tp, x_nchw):
    x = x_nchw.astype(jnp.float32)

    def conv_valid(x, w, b):
        n, _, hh, ww = x.shape
        co, ci, khs, kws = w.shape
        oh, ow = hh - khs + 1, ww - kws + 1
        out = jnp.zeros((n, co, oh, ow), jnp.float32)
        for kh in range(khs):
            for kw in range(kws):
                out = out + jnp.einsum('nchw,oc->nohw',
                                       x[:, :, kh:kh + oh, kw:kw + ow],
                                       w[:, :, kh, kw])
        return out + b[None, :, None, None]

    def pool2x2(x):
        n, c, hh, ww = x.shape
        return x.reshape(n, c, hh // 2, 2, ww // 2, 2).max(axis=(3, 5))

    a = pool2x2(jax.nn.relu(conv_valid(x, tp['w1'], tp['b1'])))
    a = pool2x2(jax.nn.relu(conv_valid(a, tp['w2'], tp['b2'])))
    f = a.reshape(x.shape[0], 16 * 4 * 4)                    # NCHW flatten
    h = jax.nn.relu(f @ tp['w3'].T + tp['b3'])
    h = jax.nn.relu(h @ tp['w4'].T + tp['b4'])
    return h @ tp['w5'].T + tp['b5']


# ---------------------------------------------------------------------------
# Main
# ---------------------------------------------------------------------------

if __name__ == '__main__':
    key = jax.random.PRNGKey(0)
    k_param, k_x = jax.random.split(key)

    torch_params = init_torch_params(k_param)
    params = prepare_params(torch_params)

    # MNIST-shaped input (the architecture requires 28x28): batch=2, NCHW.
    x = jax.random.normal(k_x, (2, 1, 28, 28), dtype=jnp.float32)

    logits = jax.jit(lenet_forward)(params, x)
    jax.block_until_ready(logits)

    assert logits.shape == (2, 10), logits.shape
    assert logits.dtype == jnp.float32

    # Numerical check vs. plain-JAX reference (bf16 conv2/fc -> 4% tolerance).
    ref = lenet_reference(torch_params, x)
    rel_err = float(jnp.linalg.norm(logits - ref)
                    / jnp.maximum(jnp.linalg.norm(ref), 1e-3))
    assert rel_err < 0.04, f'relative error vs reference too large: {rel_err}'

    print('KERNEL_OK')
</pallas_src>

<mosaic_0001>
module attributes {stable_mosaic.version = 11 : i64} {
  func.func @lenet_kernel(%arg0: i32, %arg1: memref<1x28x32xf32, #tpu.memory_space<vmem>>, %arg2: memref<160x256xf32, #tpu.memory_space<vmem>>, %arg3: memref<640x128xbf16, #tpu.memory_space<vmem>>, %arg4: memref<256x128xbf16, #tpu.memory_space<vmem>>, %arg5: memref<128x128xbf16, #tpu.memory_space<vmem>>, %arg6: memref<128x128xbf16, #tpu.memory_space<vmem>>, %arg7: memref<5x128xf32, #tpu.memory_space<vmem>>, %arg8: memref<1x1x128xf32, #tpu.memory_space<vmem>>) attributes {dimension_semantics = [#tpu.dimension_semantics<parallel>], iteration_bounds = array<i64: 2>, scalar_prefetch = 0 : i64, scratch_operands = 0 : i64, tpu.core_type = #tpu.core_type<tc>, window_params = [{transform_indices = @transform_0, window_bounds = array<i64: 1, 28, 32>}, {pipeline_mode = #tpu.pipeline_mode<synchronous>, transform_indices = @transform_1, window_bounds = array<i64: 160, 256>}, {pipeline_mode = #tpu.pipeline_mode<synchronous>, transform_indices = @transform_2, window_bounds = array<i64: 640, 128>}, {pipeline_mode = #tpu.pipeline_mode<synchronous>, transform_indices = @transform_3, window_bounds = array<i64: 256, 128>}, {pipeline_mode = #tpu.pipeline_mode<synchronous>, transform_indices = @transform_4, window_bounds = array<i64: 128, 128>}, {pipeline_mode = #tpu.pipeline_mode<synchronous>, transform_indices = @transform_5, window_bounds = array<i64: 128, 128>}, {pipeline_mode = #tpu.pipeline_mode<synchronous>, transform_indices = @transform_6, window_bounds = array<i64: 5, 128>}, {transform_indices = @transform_7, window_bounds = array<i64: 1, 1, 128>}]} {
    %c0 = arith.constant 0 : index
    %c0_0 = arith.constant 0 : index
    %c0_1 = arith.constant 0 : index
    %0 = vector.load %arg1[%c0, %c0_0, %c0_1] : memref<1x28x32xf32, #tpu.memory_space<vmem>>, vector<1x28x32xf32>
    %c0_2 = arith.constant 0 : index
    %c0_3 = arith.constant 0 : index
    %1 = vector.load %arg7[%c0_2, %c0_3] : memref<5x128xf32, #tpu.memory_space<vmem>>, vector<5x128xf32>
    %2 = vector.extract_strided_slice %1 {offsets = [0, 0], sizes = [1, 128], strides = [1, 1]} : vector<5x128xf32> to vector<1x128xf32>
    %3 = vector.shape_cast %2 : vector<1x128xf32> to vector<128xf32>
    %4 = vector.extract_strided_slice %1 {offsets = [1, 0], sizes = [1, 128], strides = [1, 1]} : vector<5x128xf32> to vector<1x128xf32>
    %5 = vector.shape_cast %4 : vector<1x128xf32> to vector<128xf32>
    %6 = vector.extract_strided_slice %1 {offsets = [2, 0], sizes = [1, 128], strides = [1, 1]} : vector<5x128xf32> to vector<1x128xf32>
    %7 = vector.shape_cast %6 : vector<1x128xf32> to vector<128xf32>
    %8 = vector.extract_strided_slice %1 {offsets = [3, 0], sizes = [1, 128], strides = [1, 1]} : vector<5x128xf32> to vector<1x128xf32>
    %9 = vector.shape_cast %8 : vector<1x128xf32> to vector<128xf32>
    %10 = vector.extract_strided_slice %1 {offsets = [4, 0], sizes = [1, 128], strides = [1, 1]} : vector<5x128xf32> to vector<1x128xf32>
    %11 = vector.shape_cast %10 : vector<1x128xf32> to vector<128xf32>
    %12 = vector.extract_strided_slice %0 {offsets = [0, 0, 0], sizes = [1, 24, 32], strides = [1, 1, 1]} : vector<1x28x32xf32> to vector<1x24x32xf32>
    %13 = vector.extract_strided_slice %0 {offsets = [0, 1, 0], sizes = [1, 24, 32], strides = [1, 1, 1]} : vector<1x28x32xf32> to vector<1x24x32xf32>
    %14 = vector.extract_strided_slice %0 {offsets = [0, 2, 0], sizes = [1, 24, 32], strides = [1, 1, 1]} : vector<1x28x32xf32> to vector<1x24x32xf32>
    %15 = vector.extract_strided_slice %0 {offsets = [0, 3, 0], sizes = [1, 24, 32], strides = [1, 1, 1]} : vector<1x28x32xf32> to vector<1x24x32xf32>
    %16 = vector.extract_strided_slice %0 {offsets = [0, 4, 0], sizes = [1, 24, 32], strides = [1, 1, 1]} : vector<1x28x32xf32> to vector<1x24x32xf32>
    %17 = tpu.concatenate %12, %13, %14, %15, %16 in 2 : vector<1x24x32xf32>, vector<1x24x32xf32>, vector<1x24x32xf32>, vector<1x24x32xf32>, vector<1x24x32xf32> -> vector<1x24x160xf32>
    %18 = vector.shape_cast %17 : vector<1x24x160xf32> to vector<24x160xf32>
    %c0_4 = arith.constant 0 : index
    %c0_5 = arith.constant 0 : index
    %19 = vector.load %arg2[%c0_4, %c0_5] : memref<160x256xf32, #tpu.memory_space<vmem>>, vector<160x256xf32>
    %cst = arith.constant dense<0.000000e+00> : vector<24x256xf32>
    %20 = tpu.matmul %18, %19, %cst {dimension_numbers = #tpu.dot_dimension_numbers<[1], [0], [0], [1], [0, 0, 1, 1], [], []>} : vector<24x160xf32>, vector<160x256xf32>, vector<24x256xf32> -> vector<24x256xf32>
    %21 = vector.shape_cast %20 : vector<24x256xf32> to vector<1x12x2x256xf32>
    %22 = vector.extract_strided_slice %21 {offsets = [0, 0, 0, 0], sizes = [1, 12, 1, 256], strides = [1, 1, 1, 1]} : vector<1x12x2x256xf32> to vector<1x12x1x256xf32>
    %23 = vector.shape_cast %22 : vector<1x12x1x256xf32> to vector<1x12x256xf32>
    %24 = vector.extract_strided_slice %21 {offsets = [0, 0, 1, 0], sizes = [1, 12, 1, 256], strides = [1, 1, 1, 1]} : vector<1x12x2x256xf32> to vector<1x12x1x256xf32>
    %25 = vector.shape_cast %24 : vector<1x12x1x256xf32> to vector<1x12x256xf32>
    %26 = arith.maximumf %23, %25 : vector<1x12x256xf32>
    %27 = vector.extract_strided_slice %26 {offsets = [0, 0, 0], sizes = [1, 12, 128], strides = [1, 1, 1]} : vector<1x12x256xf32> to vector<1x12x128xf32>
    %28 = vector.extract_strided_slice %26 {offsets = [0, 0, 128], sizes = [1, 12, 128], strides = [1, 1, 1]} : vector<1x12x256xf32> to vector<1x12x128xf32>
    %29 = arith.maximumf %27, %28 : vector<1x12x128xf32>
    %30 = vector.shape_cast %3 : vector<128xf32> to vector<1x1x128xf32>
    %31 = vector.broadcast %30 : vector<1x1x128xf32> to vector<1x12x128xf32>
    %32 = arith.addf %29, %31 : vector<1x12x128xf32>
    %cst_6 = arith.constant 0.000000e+00 : f32
    %33 = vector.broadcast %cst_6 : f32 to vector<1x12x128xf32>
    %34 = arith.maximumf %32, %33 : vector<1x12x128xf32>
    %35 = vector.extract_strided_slice %34 {offsets = [0, 0, 0], sizes = [1, 8, 128], strides = [1, 1, 1]} : vector<1x12x128xf32> to vector<1x8x128xf32>
    %36 = vector.extract_strided_slice %34 {offsets = [0, 1, 0], sizes = [1, 8, 128], strides = [1, 1, 1]} : vector<1x12x128xf32> to vector<1x8x128xf32>
    %37 = vector.extract_strided_slice %34 {offsets = [0, 2, 0], sizes = [1, 8, 128], strides = [1, 1, 1]} : vector<1x12x128xf32> to vector<1x8x128xf32>
    %38 = vector.extract_strided_slice %34 {offsets = [0, 3, 0], sizes = [1, 8, 128], strides = [1, 1, 1]} : vector<1x12x128xf32> to vector<1x8x128xf32>
    %39 = vector.extract_strided_slice %34 {offsets = [0, 4, 0], sizes = [1, 8, 128], strides = [1, 1, 1]} : vector<1x12x128xf32> to vector<1x8x128xf32>
    %40 = tpu.concatenate %35, %36, %37, %38, %39 in 2 : vector<1x8x128xf32>, vector<1x8x128xf32>, vector<1x8x128xf32>, vector<1x8x128xf32>, vector<1x8x128xf32> -> vector<1x8x640xf32>
    %41 = vector.shape_cast %40 : vector<1x8x640xf32> to vector<8x640xf32>
    %42 = arith.truncf %41 : vector<8x640xf32> to vector<8x640xbf16>
    %c0_7 = arith.constant 0 : index
    %c0_8 = arith.constant 0 : index
    %43 = vector.load %arg3[%c0_7, %c0_8] : memref<640x128xbf16, #tpu.memory_space<vmem>>, vector<640x128xbf16>
    %cst_9 = arith.constant dense<0.000000e+00> : vector<8x128xf32>
    %44 = tpu.matmul %42, %43, %cst_9 {dimension_numbers = #tpu.dot_dimension_numbers<[1], [0], [0], [1], [0, 0, 1, 1], [], []>} : vector<8x640xbf16>, vector<640x128xbf16>, vector<8x128xf32> -> vector<8x128xf32>
    %45 = vector.shape_cast %44 : vector<8x128xf32> to vector<1x4x2x128xf32>
    %46 = vector.extract_strided_slice %45 {offsets = [0, 0, 0, 0], sizes = [1, 4, 1, 128], strides = [1, 1, 1, 1]} : vector<1x4x2x128xf32> to vector<1x4x1x128xf32>
    %47 = vector.shape_cast %46 : vector<1x4x1x128xf32> to vector<1x4x128xf32>
    %48 = vector.extract_strided_slice %45 {offsets = [0, 0, 1, 0], sizes = [1, 4, 1, 128], strides = [1, 1, 1, 1]} : vector<1x4x2x128xf32> to vector<1x4x1x128xf32>
    %49 = vector.shape_cast %48 : vector<1x4x1x128xf32> to vector<1x4x128xf32>
    %50 = arith.maximumf %47, %49 : vector<1x4x128xf32>
    %51 = vector.shape_cast %5 : vector<128xf32> to vector<1x1x128xf32>
    %52 = vector.broadcast %51 : vector<1x1x128xf32> to vector<1x4x128xf32>
    %53 = arith.addf %50, %52 : vector<1x4x128xf32>
    %cst_10 = arith.constant 0.000000e+00 : f32
    %54 = vector.broadcast %cst_10 : f32 to vector<1x4x128xf32>
    %55 = arith.maximumf %53, %54 : vector<1x4x128xf32>
    %56 = vector.extract_strided_slice %55 {offsets = [0, 0, 0], sizes = [1, 4, 16], strides = [1, 1, 1]} : vector<1x4x128xf32> to vector<1x4x16xf32>
    %57 = vector.extract_strided_slice %55 {offsets = [0, 0, 16], sizes = [1, 4, 16], strides = [1, 1, 1]} : vector<1x4x128xf32> to vector<1x4x16xf32>
    %58 = arith.maximumf %56, %57 : vector<1x4x16xf32>
    %59 = vector.extract_strided_slice %55 {offsets = [0, 0, 32], sizes = [1, 4, 16], strides = [1, 1, 1]} : vector<1x4x128xf32> to vector<1x4x16xf32>
    %60 = vector.extract_strided_slice %55 {offsets = [0, 0, 48], sizes = [1, 4, 16], strides = [1, 1, 1]} : vector<1x4x128xf32> to vector<1x4x16xf32>
    %61 = arith.maximumf %59, %60 : vector<1x4x16xf32>
    %62 = vector.extract_strided_slice %55 {offsets = [0, 0, 64], sizes = [1, 4, 16], strides = [1, 1, 1]} : vector<1x4x128xf32> to vector<1x4x16xf32>
    %63 = vector.extract_strided_slice %55 {offsets = [0, 0, 80], sizes = [1, 4, 16], strides = [1, 1, 1]} : vector<1x4x128xf32> to vector<1x4x16xf32>
    %64 = arith.maximumf %62, %63 : vector<1x4x16xf32>
    %65 = vector.extract_strided_slice %55 {offsets = [0, 0, 96], sizes = [1, 4, 16], strides = [1, 1, 1]} : vector<1x4x128xf32> to vector<1x4x16xf32>
    %66 = vector.extract_strided_slice %55 {offsets = [0, 0, 112], sizes = [1, 4, 16], strides = [1, 1, 1]} : vector<1x4x128xf32> to vector<1x4x16xf32>
    %67 = arith.maximumf %65, %66 : vector<1x4x16xf32>
    %68 = tpu.concatenate %58, %61, %64, %67 in 2 : vector<1x4x16xf32>, vector<1x4x16xf32>, vector<1x4x16xf32>, vector<1x4x16xf32> -> vector<1x4x64xf32>
    %69 = vector.extract_strided_slice %68 {offsets = [0, 0, 0], sizes = [1, 1, 64], strides = [1, 1, 1]} : vector<1x4x64xf32> to vector<1x1x64xf32>
    %70 = vector.shape_cast %69 : vector<1x1x64xf32> to vector<1x64xf32>
    %71 = vector.extract_strided_slice %68 {offsets = [0, 1, 0], sizes = [1, 1, 64], strides = [1, 1, 1]} : vector<1x4x64xf32> to vector<1x1x64xf32>
    %72 = vector.shape_cast %71 : vector<1x1x64xf32> to vector<1x64xf32>
    %73 = vector.extract_strided_slice %68 {offsets = [0, 2, 0], sizes = [1, 1, 64], strides = [1, 1, 1]} : vector<1x4x64xf32> to vector<1x1x64xf32>
    %74 = vector.shape_cast %73 : vector<1x1x64xf32> to vector<1x64xf32>
    %75 = vector.extract_strided_slice %68 {offsets = [0, 3, 0], sizes = [1, 1, 64], strides = [1, 1, 1]} : vector<1x4x64xf32> to vector<1x1x64xf32>
    %76 = vector.shape_cast %75 : vector<1x1x64xf32> to vector<1x64xf32>
    %77 = tpu.concatenate %70, %72, %74, %76 in 1 : vector<1x64xf32>, vector<1x64xf32>, vector<1x64xf32>, vector<1x64xf32> -> vector<1x256xf32>
    %78 = arith.truncf %77 : vector<1x256xf32> to vector<1x256xbf16>
    %c0_11 = arith.constant 0 : index
    %c0_12 = arith.constant 0 : index
    %79 = vector.load %arg4[%c0_11, %c0_12] : memref<256x128xbf16, #tpu.memory_space<vmem>>, vector<256x128xbf16>
    %cst_13 = arith.constant dense<0.000000e+00> : vector<1x128xf32>
    %80 = tpu.matmul %78, %79, %cst_13 {dimension_numbers = #tpu.dot_dimension_numbers<[1], [0], [0], [1], [0, 0, 1, 1], [], []>} : vector<1x256xbf16>, vector<256x128xbf16>, vector<1x128xf32> -> vector<1x128xf32>
    %81 = vector.shape_cast %7 : vector<128xf32> to vector<1x128xf32>
    %82 = arith.addf %80, %81 : vector<1x128xf32>
    %cst_14 = arith.constant 0.000000e+00 : f32
    %83 = vector.broadcast %cst_14 : f32 to vector<1x128xf32>
    %84 = arith.maximumf %82, %83 : vector<1x128xf32>
    %85 = arith.truncf %84 : vector<1x128xf32> to vector<1x128xbf16>
    %c0_15 = arith.constant 0 : index
    %c0_16 = arith.constant 0 : index
    %86 = vector.load %arg5[%c0_15, %c0_16] : memref<128x128xbf16, #tpu.memory_space<vmem>>, vector<128x128xbf16>
    %cst_17 = arith.constant dense<0.000000e+00> : vector<1x128xf32>
    %87 = tpu.matmul %85, %86, %cst_17 {dimension_numbers = #tpu.dot_dimension_numbers<[1], [0], [0], [1], [0, 0, 1, 1], [], []>} : vector<1x128xbf16>, vector<128x128xbf16>, vector<1x128xf32> -> vector<1x128xf32>
    %88 = vector.shape_cast %9 : vector<128xf32> to vector<1x128xf32>
    %89 = arith.addf %87, %88 : vector<1x128xf32>
    %cst_18 = arith.constant 0.000000e+00 : f32
    %90 = vector.broadcast %cst_18 : f32 to vector<1x128xf32>
    %91 = arith.maximumf %89, %90 : vector<1x128xf32>
    %92 = arith.truncf %91 : vector<1x128xf32> to vector<1x128xbf16>
    %c0_19 = arith.constant 0 : index
    %c0_20 = arith.constant 0 : index
    %93 = vector.load %arg6[%c0_19, %c0_20] : memref<128x128xbf16, #tpu.memory_space<vmem>>, vector<128x128xbf16>
    %cst_21 = arith.constant dense<0.000000e+00> : vector<1x128xf32>
    %94 = tpu.matmul %92, %93, %cst_21 {dimension_numbers = #tpu.dot_dimension_numbers<[1], [0], [0], [1], [0, 0, 1, 1], [], []>} : vector<1x128xbf16>, vector<128x128xbf16>, vector<1x128xf32> -> vector<1x128xf32>
    %95 = vector.shape_cast %11 : vector<128xf32> to vector<1x128xf32>
    %96 = arith.addf %94, %95 : vector<1x128xf32>
    %97 = vector.shape_cast %96 : vector<1x128xf32> to vector<1x1x128xf32>
    %c0_22 = arith.constant 0 : index
    %c0_23 = arith.constant 0 : index
    %c0_24 = arith.constant 0 : index
    %98 = vector.load %arg8[%c0_22, %c0_23, %c0_24] : memref<1x1x128xf32, #tpu.memory_space<vmem>>, vector<1x1x128xf32>
    tpu.vector_store %arg8[%c0_22, %c0_23, %c0_24], %97 {strides = array<i32>} : memref<1x1x128xf32, #tpu.memory_space<vmem>>, vector<1x1x128xf32>,
    return
  }
  func.func @transform_0(%arg0: i32) -> (i32, i32, i32) {
    %c0_i32 = arith.constant 0 : i32
    %c0_i32_0 = arith.constant 0 : i32
    %c0_i32_1 = arith.constant 0 : i32
    return %arg0, %c0_i32, %c0_i32_0 : i32, i32, i32
  }
  func.func @transform_1(%arg0: i32) -> (i32, i32) {
    %c0_i32 = arith.constant 0 : i32
    %c0_i32_0 = arith.constant 0 : i32
    %c0_i32_1 = arith.constant 0 : i32
    return %c0_i32, %c0_i32_0 : i32, i32
  }
  func.func @transform_2(%arg0: i32) -> (i32, i32) {
    %c0_i32 = arith.constant 0 : i32
    %c0_i32_0 = arith.constant 0 : i32
    %c0_i32_1 = arith.constant 0 : i32
    return %c0_i32, %c0_i32_0 : i32, i32
  }
  func.func @transform_3(%arg0: i32) -> (i32, i32) {
    %c0_i32 = arith.constant 0 : i32
    %c0_i32_0 = arith.constant 0 : i32
    %c0_i32_1 = arith.constant 0 : i32
    return %c0_i32, %c0_i32_0 : i32, i32
  }
  func.func @transform_4(%arg0: i32) -> (i32, i32) {
    %c0_i32 = arith.constant 0 : i32
    %c0_i32_0 = arith.constant 0 : i32
    %c0_i32_1 = arith.constant 0 : i32
    return %c0_i32, %c0_i32_0 : i32, i32
  }
  func.func @transform_5(%arg0: i32) -> (i32, i32) {
    %c0_i32 = arith.constant 0 : i32
    %c0_i32_0 = arith.constant 0 : i32
    %c0_i32_1 = arith.constant 0 : i32
    return %c0_i32, %c0_i32_0 : i32, i32
  }
  func.func @transform_6(%arg0: i32) -> (i32, i32) {
    %c0_i32 = arith.constant 0 : i32
    %c0_i32_0 = arith.constant 0 : i32
    %c0_i32_1 = arith.constant 0 : i32
    return %c0_i32, %c0_i32_0 : i32, i32
  }
  func.func @transform_7(%arg0: i32) -> (i32, i32, i32) {
    %c0_i32 = arith.constant 0 : i32
    %c0_i32_0 = arith.constant 0 : i32
    %c0_i32_1 = arith.constant 0 : i32
    return %arg0, %c0_i32, %c0_i32_0 : i32, i32, i32
  }
}

</mosaic_0001>

<bundles_post_ra>
// kernel: lenet_forward.1
= control target key start
LH: loop header
LB: loop body
LE: loop exit
PB: predicated region body
PF: predicated region fallthrough
CT: control target
= control target key end

     0   :  { %12 = vsyncpa [#allocation3], 0  ;;  %s3260_s0 = inlined_call_operand.vmem [shape: f32[2,28,32], index: 0, kind: input, shape index: {}]   ;;  %s3261_s1 = inlined_call_operand.vmem [shape: f32[160,256], index: 1, kind: input, shape index: {}]   ;;  %s3262_s2 = inlined_call_operand.hbm [shape: bf16[640,128], index: 2, kind: input, shape index: {}]   ;;  %s3263_s3 = inlined_call_operand.hbm [shape: bf16[256,128], index: 3, kind: input, shape index: {}]   ;;  %s3264_s4 = inlined_call_operand.hbm [shape: bf16[128,128], index: 4, kind: input, shape index: {}]   ;;  %s3265_s5 = inlined_call_operand.hbm [shape: bf16[128,128], index: 5, kind: input, shape index: {}]   ;;  %s3266_s6 = inlined_call_operand.vmem [shape: f32[5,128], index: 6, kind: input, shape index: {}]   ;;  %s3267_s7 = inlined_call_operand.hbm [shape: f32[2,1,128], index: 7, kind: output, shape index: {}]  }
   0x1   :  { %13 = vsyncpa [#allocation6], 0 }
   0x2   :  { %14 = vsyncpa [#allocation9], 0 }
   0x3   :  { %15 = vsyncpa [#allocation4], 0 }
   0x4   :  { %17 = vsyncpa [#allocation4 + $0x1], 0  ;;  %s2685_s24 = smov 0   ;;  %s2687_s25 = smov 0  }
   0x5   :  { %s2689_s26 = smov 0   ;;  %s2691_s27 = smov 0  }
   0x6 LB: > { %3274 = sst [smem:[#allocation15_spill]] %s2624_s26  ;;  %s2706_s28 = sadd.s32 4294967295, %s2628_s27   ;;  %s2628_s27 = sphi %s2691_s27, %s3291_s27   ;;  %s2624_s26 = sphi %s2689_s26, %s3296_s26   ;;  %s2620_s25 = sphi %s2687_s25, %s3295_s25   ;;  %s2616_s24 = sphi %s2685_s24, %s3294_s24  }
   0x7   : > { %s1958_s29 = sadd.s32 4294967294, %s2628_s27   ;;  %s2710_s30 = sadd.s32 1, %s2628_s27  }
   0x8   : > { %3275 = sst [smem:[#allocation16_spill]] %s2710_s30  ;;  %s182_s8 = sadd.s32 1, %s2624_s26 }
   0x9   : > { %s179_s9 = ssub.s32 %s2628_s27, %s2710_s30  ;;  %p192_p0 = scmp.ne.s32.totalorder %s2624_s26, %s2620_s25 }
   0xa   : > { %p180_p1 = scmp.eq.s32.totalorder %s179_s9, 0  ;;  %p193_p2 = scmp.eq.s32.totalorder %s2706_s28, 1 }
   0xb   : > { %p198_p3 = scmp.ne.s32.totalorder %s2620_s25, %s2616_s24  ;;  %p199_p4 = scmp.eq.s32.totalorder %s1958_s29, 1 }
   0xc   : > { %s2721_s10 = scalar_select %p180_p1, %s2624_s26, %s182_s8  }
   0xd   : > { %p2723_p5 = por %p193_p2, %p192_p0  ;;  %p2727_p6 = por %p199_p4, %p198_p3 }
   0xe   : > { %3276 = sst [smem:[#allocation17_spill]] %s2721_s10  ;;  %p1959_p7 = scmp.ge.s32.totalorder %s2628_s27, 1 }
   0xf   : > { %s3277_s11 = scalar_select %p2723_p5, 1, 0 }
  0x10   : > { %s3278_s12 = scalar_select %p2727_p6, 1, 0 }
  0x11   : > { %p206_p8 = scmp.lt.s32.totalorder %s2628_s27, 3  ;;  %p3268_p9 = scmp.eq.s32.totalorder %s2706_s28, 0 }
  0x12   : > { %s2630_s14 = smov [#allocation5]   ;;  %s2631_s17 = smov [#allocation2]  }
  0x13   : > { %p2734_p10 = pnand %p1959_p7, %p206_p8  ;;  %s234_s15 = sshll.u32 %s2630_s14, 4  ;;  %s2740_s15 = int_to_ptr.vmem [resolvable:$true] %s234_s15 }
  0x14   : > { %s221_s18 = sshll.u32 %s2631_s17, 4  ;;  %s2632_s19 = smov [#allocation7]   ;;  %s2748_s18 = int_to_ptr.vmem [resolvable:$true] %s221_s18 }
  0x15   : > { %s3279_s13 = scalar_select %p2734_p10, 1, 0 }
  0x16   : > { %p2278_p11 = pneg %p2734_p10  ;;  %s2750_s20 = sshll.u32 %s2632_s19, 4  ;;  %s248_s20 = int_to_ptr.vmem [resolvable:$true] %s2750_s20 }
  0x17   : > { %s2442_s23 = scalar_lea.hbm %s3263_s3, 2048 }
  0x18   : > { %p2744_p12 = pnand %p3268_p9, %p2278_p11  ;;  %p2443_p13 = scmp.ne.s32.totalorder %s3263_s3, %s2442_s23 }
  0x19   : > { %p2449_p3 = scmp.lt.u32.totalorder %s2442_s23, %s3263_s3 }
  0x1a   : > { %p2760_p0 = pneg %p2744_p12 }
  0x1c   : > { %p2445_p1 = pnand %p2760_p0, %p2443_p13 }
  0x1e   : > { %p2446_p2 = pneg %p2445_p1 }
  0x20   : > { %p2451_p4 = pnand %p2449_p3, %p2446_p2 }
  0x22   : > { %2454 = shalt.err (!%p2451_p4)
}
  0x23   : > { %s2455_s19 = scalar_lea.vmem %s2740_s15, 2048  ;;  %p2463_p9 = scmp.lt.s32.totalorder %s2740_s15, %s2740_s15 }
  0x24   : > { %p2456_p7 = scmp.ne.s32.totalorder %s2740_s15, %s2455_s19  ;;  %p2464_p6 = scmp.lt.s32.totalorder %s2455_s19, %s2455_s19 }
  0x26   : > { %p2458_p8 = pnand %p2456_p7, %p2760_p0  ;;  %p2465_p13 = por %p2464_p6, %p2463_p9 }
  0x28   : > { %p2459_p11 = pneg %p2458_p8 }
  0x2a   : > { %p2466_p1 = pnand %p2465_p13, %p2459_p11 }
  0x2c   : > { %2469 = shalt.err (!%p2466_p1)
}
  0x2d   : > { %s2633_s21 = smov 64   ;;  %s2634_s22 = smov 4  }
  0x2e   : > { %2284 = dma.hbm_to_vmem [thread:$0]  (!%p2744_p12), %s3263_s3, 2048, %s2740_s15, [#allocation6], %s2633_s21, %s2633_s21, %s2634_s22  }
  0x2f   : > { %s2470_s17 = scalar_lea.hbm %s3262_s2, 5120 }
  0x30   : > { %p2471_p6 = scmp.ne.s32.totalorder %s3262_s2, %s2470_s17  ;;  %p2477_p3 = scmp.lt.u32.totalorder %s2470_s17, %s3262_s2 }
  0x32   : > { %p2473_p9 = pnand %p2471_p6, %p2760_p0 }
  0x34   : > { %p2474_p2 = pneg %p2473_p9 }
  0x36   : > { %p2479_p4 = pnand %p2477_p3, %p2474_p2 }
  0x38   : > { %2482 = shalt.err (!%p2479_p4)
}
  0x39   : > { %s2483_s15 = scalar_lea.vmem %s2748_s18, 5120  ;;  %p2491_p13 = scmp.lt.s32.totalorder %s2748_s18, %s2748_s18 }
  0x3a   : > { %p2484_p7 = scmp.ne.s32.totalorder %s2748_s18, %s2483_s15  ;;  %p2492_p1 = scmp.lt.s32.totalorder %s2483_s15, %s2483_s15 }
  0x3c   : > { %p2486_p8 = pnand %p2484_p7, %p2760_p0  ;;  %p2493_p6 = por %p2492_p1, %p2491_p13 }
  0x3e   : > { %p2487_p11 = pneg %p2486_p8 }
  0x40   : > { %p2494_p9 = pnand %p2493_p6, %p2487_p11 }
  0x42   : > { %2497 = shalt.err (!%p2494_p9)
}
  0x43   : > { %2281 = dma.hbm_to_vmem [thread:$0]  (!%p2744_p12), %s3262_s2, 5120, %s2748_s18, [#allocation3], %s2633_s21, %s2633_s21, %s2634_s22  }
  0x44   : > { %s2498_s29 = scalar_lea.hbm %s3264_s4, 1024 }
  0x45   : > { %p2499_p2 = scmp.ne.s32.totalorder %s3264_s4, %s2498_s29  ;;  %p2505_p7 = scmp.lt.u32.totalorder %s2498_s29, %s3264_s4 }
  0x47   : > { %p2501_p3 = pnand %p2499_p2, %p2760_p0 }
  0x49   : > { %p2502_p4 = pneg %p2501_p3 }
  0x4b   : > { %p2507_p8 = pnand %p2505_p7, %p2502_p4 }
  0x4d   : > { %2510 = shalt.err (!%p2507_p8)
}
  0x4e   : > { %s2511_s15 = scalar_lea.vmem %s248_s20, 1024  ;;  %p2519_p6 = scmp.lt.s32.totalorder %s248_s20, %s248_s20 }
  0x4f   : > { %p2512_p11 = scmp.ne.s32.totalorder %s248_s20, %s2511_s15  ;;  %p2520_p9 = scmp.lt.s32.totalorder %s2511_s15, %s2511_s15 }
  0x51   : > { %p2514_p13 = pnand %p2512_p11, %p2760_p0  ;;  %p2521_p5 = por %p2520_p9, %p2519_p6 }
  0x53   : > { %p2515_p1 = pneg %p2514_p13 }
  0x55   : > { %p2522_p10 = pnand %p2521_p5, %p2515_p1 }
  0x57   : > { %2525 = shalt.err (!%p2522_p10)
}
  0x58   : > { %2287 = dma.hbm_to_vmem [thread:$0]  (!%p2744_p12), %s3264_s4, 1024, %s248_s20, [#allocation6], %s2633_s21, %s2633_s21, %s2634_s22  }
  0x59   : > { %s2635_s30 = smov [#allocation8]   ;;  %s2526_s8 = scalar_lea.hbm %s3265_s5, 1024 }
  0x5a   : > { %s260_s10 = sshll.u32 %s2635_s30, 4  ;;  %p2527_p5 = scmp.ne.s32.totalorder %s3265_s5, %s2526_s8  ;;  %s261_s10 = int_to_ptr.vmem [resolvable:$true] %s260_s10 }
  0x5b   : > { %p2533_p3 = scmp.lt.u32.totalorder %s2526_s8, %s3265_s5 }
  0x5c   : > { %p2529_p10 = pnand %p2527_p5, %p2760_p0 }
  0x5e   : > { %p2530_p2 = pneg %p2529_p10 }
  0x60   : > { %p2535_p4 = pnand %p2533_p3, %p2530_p2 }
  0x62   : > { %2538 = shalt.err (!%p2535_p4)
}
  0x63   : > { %s2539_s20 = scalar_lea.vmem %s261_s10, 1024  ;;  %p2547_p13 = scmp.lt.s32.totalorder %s261_s10, %s261_s10 }
  0x64   : > { %p2540_p7 = scmp.ne.s32.totalorder %s261_s10, %s2539_s20  ;;  %p2548_p1 = scmp.lt.s32.totalorder %s2539_s20, %s2539_s20 }
  0x66   : > { %p2542_p8 = pnand %p2540_p7, %p2760_p0  ;;  %p2549_p6 = por %p2548_p1, %p2547_p13 }
  0x68   : > { %p2543_p11 = pneg %p2542_p8 }
  0x6a   : > { %p2550_p9 = pnand %p2549_p6, %p2543_p11 }
  0x6c   : > { %2553 = shalt.err (!%p2550_p9)
}
  0x6d   : > { %2290 = dma.hbm_to_vmem [thread:$0]  (!%p2744_p12), %s3265_s5, 1024, %s261_s10, [#allocation9], %s2633_s21, %s2633_s21, %s2634_s22  }
  0x6e   : > { %p3282_p5 = scmp.ne.s32.totalorder %s3279_s13, 0 }
  0x6f   : > { %p3283_p0 = scmp.eq.s32.totalorder (!%p3282_p5), %s2706_s28, 0 }
  0x70   : > { %287 = sbr.rel (%p3282_p5) target bundleno = 1815 (0x717), region = 48 }
  0x77   : > { %2599 = dma.done.wait (%p3283_p0), [#allocation3], 5120   ;;  %p3284_p10 = pmov %p3283_p0 }
  0x78   : > { %p3285_p2 = pmov %p3283_p0 }
  0x79   : > { %2601 = vsyncadd (%p3284_p10), [#allocation3], 4294962176 }
  0x7a   : > { %2603 = dma.done.wait (%p3285_p2), [#allocation6], 3072   ;;  %p3286_p3 = pmov %p3283_p0 }
  0x7b   : > { %p3287_p4 = pmov %p3283_p0 }
  0x7c   : > { %2605 = vsyncadd (%p3286_p3), [#allocation6], 4294964224 }
  0x7d   : > { %2607 = dma.done.wait (%p3287_p4), [#allocation9], 1024   ;;  %p3288_p12 = pmov %p3283_p0 }
  0x7e   : > { %p330_p7 = scmp.lt.s32.totalorder %s2706_s28, 1  ;;  %vm379_vm0 = vcmask 1044480   ;;  %vm345_vm1 = vcmask 1046528   ;;  %vm362_vm2 = vcmask 1045504   ;;  %v417_v11 = vld [vmem:[%s3261_s1 + $0x8] sm:$0xff]  ;;  %v419_v12 = vld [vmem:[%s3261_s1 + $0x18] sm:$0xff] }
  0x7f   : > { %2609 = vsyncadd (%p3288_p12), [#allocation9], 4294966272  ;;  %v416_v15 = vld [vmem:[%s3261_s1] sm:$0xff]  ;;  %v418_v16 = vld [vmem:[%s3261_s1 + $0x10] sm:$0xff]  ;;  %s2636_s18 = smov 96   ;;  %v2220_v24 = vpack.c.bf16 %v419_v12, %v417_v11  ;;  %s2637_s30 = smov 32  }
  0x80   : > { %s331_s13 = scalar_select %p330_p7, %s2706_s28, 1  ;;  %v421_v17 = vld [vmem:[%s3261_s1 + $0x28] sm:$0xff]  ;;  %v423_v21 = vld [vmem:[%s3261_s1 + $0x38] sm:$0xff]  ;;  %v2222_v25 = vpack.c.bf16 %v418_v16, %v416_v15  ;;  %v420_v27 = vld [vmem:[%s3261_s1 + $0x20] sm:$0xff]  ;;  %vm396_vm3 = vcmask 1043456   ;;  %vm404_vm4 = vcmask 261120  }
  0x81   : > { %v2224_v26 = vpack.c.bf16 %v423_v21, %v421_v17  ;;  %v422_v28 = vld [vmem:[%s3261_s1 + $0x30] sm:$0xff]  ;;  %v425_v30 = vld [vmem:[%s3261_s1 + $0x48] sm:$0xff]  ;;  %v427_v31 = vld [vmem:[%s3261_s1 + $0x58] sm:$0xff]  ;;  %s2638_s14 = smov 64   ;;  %2221 = vmatprep.subr.bf16.mxu0 %v2220_v24  ;;  %vm408_vm5 = vcmask 523264   ;;  %vm412_vm6 = vcmask 785408  }
  0x82   : > { %s2066_s16 = sshll.u32 %s331_s13, 5  ;;  %2223 = vmatpush1.bf16.msra.mxu0 %v2222_v25  ;;  %v2226_v37 = vpack.c.bf16 %v422_v28, %v420_v27  ;;  %v2228_v40 = vpack.c.bf16 %v427_v31, %v425_v30  ;;  %v424_v41 = vld [vmem:[%s3261_s1 + $0x40] sm:$0xff]  ;;  %v426_v42 = vld [vmem:[%s3261_s1 + $0x50] sm:$0xff]  ;;  %v429_v44 = vld [vmem:[%s3261_s1 + $0x68] sm:$0xff]  ;;  %vm2640_vm7 = vmmov 0   ;;  %vm811_vm8 = vcmask 1041409  }
  0x83   : > { %s334_s22 = scalar_lea.vmem %s3260_s0, %s2066_s16  ;;  %2225 = vmatprep.subr.bf16.mxu0 %v2224_v26  ;;  %v431_v45 = vld [vmem:[%s3261_s1 + $0x78] sm:$0xff]  ;;  %v2230_v51 = vpack.c.bf16 %v426_v42, %v424_v41  ;;  %v428_v53 = vld [vmem:[%s3261_s1 + $0x60] sm:$0xff]  ;;  %v430_v54 = vld [vmem:[%s3261_s1 + $0x70] sm:$0xff]  ;;  %vm813_vm9 = vcmask 1042434   ;;  %vm815_vm10 = vcmask 1043459   ;;  %vm817_vm11 = vcmask 1044484  }
  0x84   : > { %v2872_v0 = vld [vmem:[%s334_s22] sm:$0xff]  ;;  %v2874_v1 = vld [vmem:[%s334_s22 + $0x8] sm:$0xff]  ;;  %v2876_v2 = vld [vmem:[%s334_s22 + $0x10] sm:$0xff]  ;;  %v2232_v52 = vpack.c.bf16 %v431_v45, %v429_v44  ;;  %v2234_v60 = vpack.c.bf16 %v430_v54, %v428_v53  ;;  %v2639_v54 = vmov 0.0   ;;  %vm819_vm12 = vcmask 1045509   ;;  %s2642_s15 = smov 112  }
  0x85   : > { %v380_v3 = vrot.slane %v2872_v0, 3  ;;  %v381_v4 = vrot.slane %v2874_v1, 3  ;;  %v346_v5 = vrot.slane %v2872_v0, 1  ;;  %v347_v6 = vrot.slane %v2874_v1, 1  ;;  %v2882_v7 = vld [vmem:[%s334_s22 + $0x18] sm:$0xf] }
  0x86   : > { %v349_v8 = vrot.slane %v2876_v2, 1  ;;  %v364_v9 = vrot.slane %v2874_v1, 2  ;;  %v366_v10 = vrot.slane %v2876_v2, 2  ;;  %v363_v19 = vrot.slane %v2872_v0, 2  ;;  %2227 = vmatpush1.bf16.msra.mxu0 %v2226_v37  ;;  %v433_v55 = vld [vmem:[%s3261_s1 + $0x88] sm:$0xff]  ;;  %v435_v56 = vld [vmem:[%s3261_s1 + $0x98] sm:$0xff] }
  0x87   : > { %v382_v13 = vsel %vm379_vm0, %v380_v3, %v381_v4  ;;  %v348_v14 = vsel %vm345_vm1, %v346_v5, %v347_v6  ;;  %v351_v20 = vrot.slane %v2882_v7, 1  ;;  %v383_v29 = vrot.slane %v2876_v2, 3  ;;  %2229 = vmatprep.subr.bf16.mxu0 %v2228_v40  ;;  %v432_v58 = vld [vmem:[%s3261_s1 + $0x80] sm:$0xff]  ;;  %v434_v59 = vld [vmem:[%s3261_s1 + $0x90] sm:$0xff]  ;;  %v437_v61 = vld [vmem:[%s3261_s1 + $0xa8] sm:$0xff]  ;;  %s2643_s20 = smov 80  }
  0x88   : > { %387 = vrot.lane.b32.xlu1 %v382_v13, %s2636_s18  ;;  %v350_v18 = vsel %vm345_vm1, %v347_v6, %v349_v8  ;;  %v367_v23 = vsel %vm362_vm2, %v364_v9, %v366_v10  ;;  %v365_v32 = vsel %vm362_vm2, %v363_v19, %v364_v9  ;;  %v397_v34 = vrot.slane %v2872_v0, 4  ;;  %v439_v62 = vld [vmem:[%s3261_s1 + $0xb8] sm:$0xff]  ;;  %v436_v3 = vld [vmem:[%s3261_s1 + $0xa0] sm:$0xff]  ;;  %v441_v6 = vld [vmem:[%s3261_s1 + $0xc8] sm:$0xff]  ;;  %p3289_p11 = scmp.ne.s32.totalorder %s3277_s11, 0  ;;  %s2644_s10 = smov [#allocation10]  }
  0x89   : > { %v2350_v22 = vpack.i.bf16 %v350_v18, %v348_v14  ;;  %v352_v33 = vsel %vm345_vm1, %v349_v8, %v351_v20  ;;  %v398_v35 = vrot.slane %v2874_v1, 4  ;;  %v385_v36 = vrot.slane %v2882_v7, 3  ;;  %v440_v9 = vld [vmem:[%s3261_s1 + $0xc0] sm:$0xff]  ;;  %v445_v12 = vld [vmem:[%s3261_s1 + $0xe8] sm:$0xff]  ;;  %v447_v13 = vld [vmem:[%s3261_s1 + $0xf8] sm:$0xff]  ;;  %s2558_s23 = sshll.u32 %s2644_s10, 4  ;;  %s2559_s23 = int_to_ptr.vmem [resolvable:$false] %s2558_s23 }
  0x8a   : > { %v400_v38 = vrot.slane %v2876_v2, 4  ;;  %v402_v39 = vrot.slane %v2882_v7, 4  ;;  %v384_v47 = vsel %vm379_vm0, %v381_v4, %v383_v29  ;;  %v368_v48 = vrot.slane %v2882_v7, 2  ;;  %2231 = vmatpush1.bf16.msra.mxu0 %v2230_v51  ;;  %v438_v4 = vld [vmem:[%s3261_s1 + $0xb0] sm:$0xff]  ;;  %v443_v7 = vld [vmem:[%s3261_s1 + $0xd8] sm:$0xff]  ;;  %v444_v15 = vld [vmem:[%s3261_s1 + $0xe0] sm:$0xff] }
  0x8b   : > { %2351 = vrot.lane.b32.xlu0 %v2350_v22, %s2637_s30  ;;  %v399_v43 = vsel %vm396_vm3, %v397_v34, %v398_v35  ;;  %v386_v50 = vsel %vm379_vm0, %v383_v29, %v385_v36  ;;  %2233 = vmatprep.subr.bf16.mxu0 %v2232_v52  ;;  %v2236_v63 = vpack.c.bf16 %v435_v56, %v433_v55  ;;  %v446_v16 = vld [vmem:[%s3261_s1 + $0xf0] sm:$0xff]  ;;  %v449_v18 = vld [vmem:[%s3261_s1 + $0x108] sm:$0xff]  ;;  %v451_v19 = vld [vmem:[%s3261_s1 + $0x118] sm:$0xff]  ;;  %vm821_vm13 = vcmask 1046534  }
  0x8c   : > { %372 = vrot.lane.b32.xlu1 %v367_v23, %s2638_s14  ;;  %1972 = vmatprep.mubr.msk.f32.mxu0 %vm404_vm4, %v399_v43  ;;  %v2951_v46 = vsel %vm396_vm3, %v398_v35, %v400_v38  ;;  %v2956_v49 = vsel %vm396_vm3, %v400_v38, %v402_v39  ;;  %v369_v57 = vsel %vm362_vm2, %v366_v10, %v368_v48  ;;  %v442_v10 = vld [vmem:[%s3261_s1 + $0xd0] sm:$0xff]  ;;  %v448_v21 = vld [vmem:[%s3261_s1 + $0x100] sm:$0xff]  ;;  %v453_v24 = vld [vmem:[%s3261_s1 + $0x128] sm:$0xff]  ;;  %vm823_vm14 = vcmask 1047559  }
  0x8d   : > { %v2238_v5 = vpack.c.bf16 %v434_v59, %v432_v58  ;;  %v2240_v8 = vpack.c.bf16 %v439_v62, %v437_v61  ;;  %v2242_v11 = vpack.c.bf16 %v438_v4, %v436_v3  ;;  %v2244_v14 = vpack.c.bf16 %v443_v7, %v441_v6  ;;  %v450_v22 = vld [vmem:[%s3261_s1 + $0x110] sm:$0xff]  ;;  %v455_v25 = vld [vmem:[%s3261_s1 + $0x138] sm:$0xff]  ;;  %v452_v27 = vld [vmem:[%s3261_s1 + $0x120] sm:$0xff] }
  0x8e   : > { %2235 = vmatpush1.bf16.msra.mxu0 %v2234_v60  ;;  %v2246_v17 = vpack.c.bf16 %v442_v10, %v440_v9  ;;  %v2248_v20 = vpack.c.bf16 %v447_v13, %v445_v12  ;;  %v2250_v23 = vpack.c.bf16 %v446_v16, %v444_v15  ;;  %v2252_v26 = vpack.c.bf16 %v451_v19, %v449_v18  ;;  %v454_v28 = vld [vmem:[%s3261_s1 + $0x130] sm:$0xff]  ;;  %v2370_v51 = vld [vmem:[#allocation2 + $0x40] sm:$0xff]   ;;  %v2376_v55 = vld [vmem:[#allocation2 + $0x108] sm:$0xff]  }
  0x8f   : > { %370 = vrot.lane.b32.xlu0 %v365_v32, %s2638_s14  ;;  %2237 = vmatprep.subr.bf16.mxu0 %v2236_v63  ;;  %v2254_v29 = vpack.c.bf16 %v450_v22, %v448_v21  ;;  %v2256_v30 = vpack.c.bf16 %v455_v25, %v453_v24  ;;  %v2258_v31 = vpack.c.bf16 %v454_v28, %v452_v27  ;;  %v2371_v52 = vld [vmem:[#allocation2] sm:$0xff]   ;;  %v2377_v56 = vld [vmem:[#allocation2 + $0x10] sm:$0xff]   ;;  %v2380_v59 = vld [vmem:[#allocation2 + $0x18] sm:$0xff]   ;;  %v556_v13 = vlaneseq }
  0x90   : > { %357 = vrot.lane.b32.xlu1 %v352_v33, %s2637_s30  ;;  %2067 = vmatprep.subr.bf16.mxu1 %v2370_v51  ;;  %v2373_v53 = vld [vmem:[#allocation2 + $0x100] sm:$0xff]   ;;  %v2379_v58 = vld [vmem:[#allocation2 + $0x110] sm:$0xff]   ;;  %v2382_v61 = vld [vmem:[#allocation2 + $0x118] sm:$0xff]   ;;  %vm1441_vm15 = vcmask 130048   ;;  %vm1444_vm0 = vcmask 392192   ;;  %s2560_s30 = scalar_lea.vmem %s2559_s23, 32 }
  0x91   : > { %2068 = vmatpush3.bf16.msra.mxu1 %v2371_v52  ;;  %v2381_v60 = vld [vmem:[#allocation2 + $0x60] sm:$0xff]   ;;  %v2384_v63 = vld [vmem:[#allocation2 + $0x68] sm:$0xff]   ;;  %v2389_v7 = vld [vmem:[#allocation2 + $0x30] sm:$0xff]   ;;  %v3070_v16 = vshrl.u32 %v556_v13, 7 }
  0x92   : > { %2239 = vmatpush1.bf16.msra.mxu0 %v2238_v5  ;;  %v2383_v62 = vld [vmem:[#allocation2 + $0x20] sm:$0xff]   ;;  %v2386_v4 = vld [vmem:[#allocation2 + $0x28] sm:$0xff]   ;;  %v2387_v5 = vld [vmem:[#allocation2 + $0x70] sm:$0xff]  }
  0x93   : > { %389 = vrot.lane.b32.xlu0 %v384_v47, %s2636_s18  ;;  %2241 = vmatprep.subr.bf16.mxu0 %v2240_v8  ;;  %v2385_v3 = vld [vmem:[#allocation2 + $0x120] sm:$0xff]   ;;  %v2388_v6 = vld [vmem:[#allocation2 + $0x128] sm:$0xff]   ;;  %v2390_v8 = vld [vmem:[#allocation2 + $0x78] sm:$0xff]  }
  0x94   : > { %391 = vrot.lane.b32.xlu1 %v386_v50, %s2636_s18  ;;  %v2391_v9 = vld [vmem:[#allocation2 + $0x130] sm:$0xff]   ;;  %v2392_v10 = vld [vmem:[#allocation2 + $0x38] sm:$0xff]   ;;  %v3078_v18 = vld [vmem:[%s3266_s6] sm:$0x1f] }
  0x95   : > { %v2394_v12 = vld [vmem:[#allocation2 + $0x138] sm:$0xff]  }
  0x96   : > { %2243 = vmatpush1.bf16.msra.mxu0 %v2242_v11  ;;  %v2393_v11 = vld [vmem:[#allocation2 + $0xc0] sm:$0xff]  }
  0x97   : > { %374 = vrot.lane.b32.xlu0 %v369_v57, %s2638_s14  ;;  %2245 = vmatprep.subr.bf16.mxu0 %v2244_v14  ;;  %v2378_v57 = vld [vmem:[#allocation2 + $0x58] sm:$0xff]   ;;  %v2641_v14 = vmov 1983009808  }
  0x98   : > { %v554_v15 = vunpack.c.l.s4 %v2641_v14 }
  0x9a   : > { %2247 = vmatpush1.bf16.msra.mxu0 %v2246_v17  ;;  %v3073_v17 = vsub.s32 0, %v3070_v16  ;;  %v555_v19 = vunpack.c.0.s8 %v554_v15 }
  0x9b   : > { %2249 = vmatprep.subr.bf16.mxu0 %v2248_v20 }
  0x9c   : > { %v716_v20 = vrot.slane %v3078_v18, %v3073_v17  ;;  %v3083_v21 = vsub.s32 %v555_v19, %v3070_v16 }
  0x9e   : > { %2251 = vmatpush1.bf16.msra.mxu0 %v2250_v23  ;;  %v718_v22 = vcombine.high %v716_v20, %v716_v20  ;;  %v3086_v23 = vrot.slane %v716_v20, %v3083_v21 }
  0x9f   : > { %2253 = vmatprep.subr.bf16.mxu0 %v2252_v26 }
  0xa0   : > { %v3089_v26 = vrot.slane %v718_v22, %v3083_v21 }
  0xa2   : > { %2255 = vmatpush1.bf16.msra.mxu0 %v2254_v29  ;;  %v3093_v29 = vcombine.high %v3086_v23, %v3086_v23 }
  0xa3   : > { %2257 = vmatprep.subr.bf16.mxu0 %v2256_v30 }
  0xa6   : > { %2259 = vmatpush1.bf16.msra.mxu0 %v2258_v31 }
  0xa7   : > { %2160 = vmatprep.subr.bf16.mxu0 %v2639_v54 }
  0xfa   : > { %v388_v32 = vpop.permute.xlu1 %387 }
  0xfd   : > { %v2352_v33 = vpop.permute.xlu0 %2351 }
  0xfe   : > { %v2354_v34 = vunpack.i.h.bf16 %v2352_v33  ;;  %v2353_v35 = vunpack.i.l.bf16 %v2352_v33  ;;  %v373_v36 = vpop.permute.xlu1 %372 }
 0x100   : > { %v405_v37 = vsel %vm404_vm4, %v2872_v0, %v2353_v35  ;;  %v406_v39 = vsel %vm404_vm4, %v2874_v1, %v2354_v34  ;;  %v3099_v34 = vcombine.high %v3089_v26, %v3089_v26 }
 0x101   : > { %v371_v38 = vpop.permute.xlu0 %370  ;;  %v410_v43 = vsel %vm408_vm5, %v406_v39, %v373_v36  ;;  %v735_v39 = vrot.slane %v3086_v23, 1 }
 0x102   : > { %v409_v40 = vsel %vm408_vm5, %v405_v37, %v371_v38  ;;  %v358_v41 = vpop.permute.xlu1 %357  ;;  %v738_v51 = vrot.slane %v3099_v34, 1 }
 0x103   : > { %v413_v42 = vsel %vm412_vm6, %v409_v40, %v388_v32  ;;  %v407_v0 = vsel %vm404_vm4, %v2876_v2, %v358_v41  ;;  %v2374_v2 = vld [vmem:[#allocation2 + $0x8] sm:$0xff]   ;;  %v736_v40 = vrot.slane %v3093_v29, 1 }
 0x104   : > { %527 = vmatmul.mubr.f32.vlgmr.msra.gmra.mrb[0].mxu0 %v413_v42 }
 0x105   : > { %v390_v44 = vpop.permute.xlu0 %389  ;;  %1973 = vmatprep.mubr.msk.f32.mxu0 %vm404_vm4, %v2951_v46  ;;  %v2372_v46 = vld [vmem:[#allocation2 + $0x48] sm:$0xff]   ;;  %2161 = vmatpush3.bf16.msra.mxu0 %v2373_v53 }
 0x106   : > { %v414_v45 = vsel %vm412_vm6, %v410_v43, %v390_v44  ;;  %v392_v47 = vpop.permute.xlu1 %391  ;;  %2069 = vmatprep.subr.bf16.mxu1 %v2372_v46  ;;  %2162 = vmatprep.subr.bf16.mxu0 %v2639_v54 }
 0x107   : > { %2070 = vmatpush3.bf16.msra.mxu1 %v2374_v2 }
 0x108   : > { %533 = vmatmul.mubr.f32.gmra.mrb[2].mxu0 %v414_v45 }
 0x109   : > { %v375_v1 = vpop.permute.xlu0 %374  ;;  %1974 = vmatprep.mubr.msk.f32.mxu0 %vm404_vm4, %v2956_v49  ;;  %v2375_v49 = vld [vmem:[#allocation2 + $0x50] sm:$0xff]   ;;  %2163 = vmatpush3.bf16.msra.mxu0 %v2376_v55 }
 0x10a   : > { %v411_v48 = vsel %vm408_vm5, %v407_v0, %v375_v1  ;;  %2071 = vmatprep.subr.bf16.mxu1 %v2375_v49  ;;  %2164 = vmatprep.subr.bf16.mxu0 %v2639_v54 }
 0x10b   : > { %v415_v50 = vsel %vm412_vm6, %v411_v48, %v392_v47  ;;  %2072 = vmatpush3.bf16.msra.mxu1 %v2377_v56 }
 0x10c   : > { %539 = vmatmul.mubr.f32.gmra.mrb[4].mxu0 %v415_v50  ;;  %2073 = vmatprep.subr.bf16.mxu1 %v2378_v57  ;;  %v737_v50 = vrot.slane %v3089_v26, 1 }
 0x10d   : > { %2165 = vmatpush3.bf16.msra.mxu0 %v2379_v58  ;;  %2176 = vmatprep.mubr.msk.bf16.mxu0 %vm2640_vm7, %v2639_v54 }
 0x10e   : > { %2166 = vmatprep.subr.bf16.mxu0 %v2639_v54 }
 0x10f   : > { %2074 = vmatpush3.bf16.msra.mxu1 %v2380_v59 }
 0x110   : > { %2075 = vmatprep.subr.bf16.mxu1 %v2381_v60 }
 0x111   : > { %2167 = vmatpush3.bf16.msra.mxu0 %v2382_v61 }
 0x112   : > { %2168 = vmatprep.subr.bf16.mxu0 %v2639_v54 }
 0x113   : > { %2076 = vmatpush3.bf16.msra.mxu1 %v2383_v62 }
 0x114   : > { %2077 = vmatprep.subr.bf16.mxu1 %v2384_v63 }
 0x115   : > { %2169 = vmatpush3.bf16.msra.mxu0 %v2385_v3 }
 0x116   : > { %2170 = vmatprep.subr.bf16.mxu0 %v2639_v54 }
 0x117   : > { %2078 = vmatpush3.bf16.msra.mxu1 %v2386_v4 }
 0x118   : > { %2079 = vmatprep.subr.bf16.mxu1 %v2387_v5 }
 0x119   : > { %2171 = vmatpush3.bf16.msra.mxu0 %v2388_v6 }
 0x11a   : > { %2172 = vmatprep.subr.bf16.mxu0 %v2639_v54 }
 0x11b   : > { %2080 = vmatpush3.bf16.msra.mxu1 %v2389_v7 }
 0x11c   : > { %2081 = vmatprep.subr.bf16.mxu1 %v2390_v8 }
 0x11d   : > { %2173 = vmatpush3.bf16.msra.mxu0 %v2391_v9 }
 0x11e   : > { %2174 = vmatprep.subr.bf16.mxu0 %v2639_v54 }
 0x11f   : > { %2082 = vmatpush3.bf16.msra.mxu1 %v2392_v10 }
 0x120   : > { %2089 = vmatprep.subr.bf16.mxu1 %v2393_v11 }
 0x121   : > { %2175 = vmatpush3.bf16.msra.mxu0 %v2394_v12 }
 0x122   : > { %2180 = vmatprep.subr.bf16.mxu0 %v2639_v54 }
 0x1d7   : > { %v528_v24 = vpop.f32.mrb[0].mxu0 }
 0x1d8   : > { %v530_v25 = vpop.f32.mrb[1].mxu0 }
 0x1d9   : > { %v551_v27 = vcombine.low %v528_v24, %v530_v25  ;;  %v552_v28 = vcombine.high %v528_v24, %v530_v25 }
 0x1db   : > { %v559_v30 = vrot.slane %v551_v27, %v3083_v21  ;;  %v566_v31 = vrot.slane %v552_v28, %v3083_v21  ;;  %v534_v32 = vpop.f32.mrb[2].mxu0 }
 0x1dc   : > { %v536_v33 = vpop.f32.mrb[3].mxu0 }
 0x1dd   : > { %v567_v35 = vcombine.high %v559_v30, %v559_v30  ;;  %v568_v36 = vcombine.high %v566_v31, %v566_v31  ;;  %v1975_v37 = vrot.slane %v559_v30, 9  ;;  %v1977_v38 = vrot.slane %v566_v31, 9 }
 0x1de   : > { %v569_v41 = vcombine.low %v534_v32, %v536_v33  ;;  %v570_v42 = vcombine.high %v534_v32, %v536_v33 }
 0x1df   : > { %v1976_v43 = vrot.slane %v567_v35, 9  ;;  %v1978_v44 = vrot.slane %v568_v36, 9  ;;  %v653_v45 = vmax.f32 %v559_v30, %v1975_v37  ;;  %v655_v0 = vmax.f32 %v566_v31, %v1977_v38  ;;  %v3103_v47 = vpop.f32.mrb[4].mxu0 }
 0x1e0   : > { %v577_v1 = vrot.slane %v569_v41, %v3083_v21  ;;  %v584_v48 = vrot.slane %v570_v42, %v3083_v21  ;;  %v542_v52 = vpop.f32.mrb[5].mxu0 }
 0x1e1   : > { %v654_v46 = vmax.f32 %v567_v35, %v1976_v43  ;;  %v656_v53 = vmax.f32 %v568_v36, %v1978_v44  ;;  %v677_v2 = vrot.slane %v653_v45, 2  ;;  %v679_v49 = vrot.slane %v655_v0, 2 }
 0x1e2   : > { %v585_v55 = vcombine.high %v577_v1, %v577_v1  ;;  %v586_v56 = vcombine.high %v584_v48, %v584_v48  ;;  %v1979_v57 = vrot.slane %v577_v1, 9  ;;  %v1981_v58 = vrot.slane %v584_v48, 9 }
 0x1e3   : > { %v678_v59 = vrot.slane %v654_v46, 2  ;;  %v680_v60 = vrot.slane %v656_v53, 2  ;;  %v701_v61 = vmax.f32 %v653_v45, %v677_v2  ;;  %v703_v62 = vmax.f32 %v655_v0, %v679_v49 }
 0x1e4   : > { %v1980_v63 = vrot.slane %v585_v55, 9  ;;  %v1982_v3 = vrot.slane %v586_v56, 9  ;;  %v657_v4 = vmax.f32 %v577_v1, %v1979_v57  ;;  %v659_v5 = vmax.f32 %v584_v48, %v1981_v58 }
 0x1e5   : > { %v702_v6 = vmax.f32 %v654_v46, %v678_v59  ;;  %v704_v7 = vmax.f32 %v656_v53, %v680_v60  ;;  %v747_v8 = vadd.f32 %v3086_v23, %v701_v61  ;;  %v749_v9 = vadd.f32 %v3093_v29, %v703_v62 }
 0x1e6   : > { %v658_v10 = vmax.f32 %v585_v55, %v1980_v63  ;;  %v660_v11 = vmax.f32 %v586_v56, %v1982_v3  ;;  %v681_v12 = vrot.slane %v657_v4, 2  ;;  %v683_v13 = vrot.slane %v659_v5, 2 }
 0x1e7   : > { %v748_v14 = vadd.f32 %v735_v39, %v702_v6  ;;  %v750_v15 = vadd.f32 %v736_v40, %v704_v7  ;;  %v759_v19 = vmax.f32 %v747_v8, 0.0  ;;  %v761_v20 = vmax.f32 %v749_v9, 0.0 }
 0x1e8   : > { %v682_v22 = vrot.slane %v658_v10, 2  ;;  %v684_v24 = vrot.slane %v660_v11, 2  ;;  %v705_v25 = vmax.f32 %v657_v4, %v681_v12  ;;  %v707_v27 = vmax.f32 %v659_v5, %v683_v13 }
 0x1e9   : > { %v760_v28 = vmax.f32 %v748_v14, 0.0  ;;  %v762_v30 = vmax.f32 %v750_v15, 0.0  ;;  %v782_v31 = vrot.slane %v759_v19, %v3073_v17  ;;  %v790_v32 = vrot.slane %v761_v20, %v3073_v17 }
 0x1ea   : > { %v706_v33 = vmax.f32 %v658_v10, %v682_v22  ;;  %v708_v35 = vmax.f32 %v660_v11, %v684_v24  ;;  %v751_v36 = vadd.f32 %v3089_v26, %v705_v25  ;;  %v753_v37 = vadd.f32 %v3099_v34, %v707_v27 }
 0x1eb   : > { %v786_v38 = vrot.slane %v760_v28, %v3073_v17  ;;  %v794_v41 = vrot.slane %v762_v30, %v3073_v17  ;;  %v587_v42 = vcombine.low %v3103_v47, %v542_v52  ;;  %v588_v43 = vcombine.high %v3103_v47, %v542_v52 }
 0x1ec   : > { %v752_v44 = vadd.f32 %v737_v50, %v706_v33  ;;  %v754_v45 = vadd.f32 %v738_v51, %v708_v35  ;;  %v763_v0 = vmax.f32 %v751_v36, 0.0  ;;  %v765_v1 = vmax.f32 %v753_v37, 0.0 }
 0x1ed   : > { %v844_v48 = vsel %vm811_vm8, %v794_v41, %v790_v32  ;;  %v595_v26 = vrot.slane %v587_v42, %v3083_v21  ;;  %v602_v34 = vrot.slane %v588_v43, %v3083_v21  ;;  %v831_v46 = vsel %vm811_vm8, %v790_v32, %v786_v38 }
 0x1ee   : > { %v764_v53 = vmax.f32 %v752_v44, 0.0  ;;  %v766_v2 = vmax.f32 %v754_v45, 0.0  ;;  %v798_v49 = vrot.slane %v763_v0, %v3073_v17  ;;  %v806_v47 = vrot.slane %v765_v1, %v3073_v17 }
 0x1ef   : > { %v603_v52 = vcombine.high %v595_v26, %v595_v26  ;;  %v604_v50 = vcombine.high %v602_v34, %v602_v34  ;;  %v1983_v51 = vrot.slane %v595_v26, 9  ;;  %v1985_v55 = vrot.slane %v602_v34, 9 }
 0x1f0   : > { %v802_v56 = vrot.slane %v764_v53, %v3073_v17  ;;  %v810_v57 = vrot.slane %v766_v2, %v3073_v17  ;;  %v832_v58 = vsel %vm813_vm9, %v794_v41, %v831_v46  ;;  %v812_v59 = vsel %vm811_vm8, %v786_v38, %v782_v31 }
 0x1f1   : > { %v1984_v60 = vrot.slane %v603_v52, 9  ;;  %v1986_v61 = vrot.slane %v604_v50, 9  ;;  %v661_v62 = vmax.f32 %v595_v26, %v1983_v51  ;;  %v663_v63 = vmax.f32 %v602_v34, %v1985_v55 }
 0x1f2   : > { %v833_v3 = vsel %vm815_vm10, %v798_v49, %v832_v58  ;;  %v870_v4 = vsel %vm811_vm8, %v802_v56, %v798_v49  ;;  %v814_v5 = vsel %vm813_vm9, %v790_v32, %v812_v59  ;;  %v857_v6 = vsel %vm811_vm8, %v798_v49, %v794_v41 }
 0x1f3   : > { %v662_v7 = vmax.f32 %v603_v52, %v1984_v60  ;;  %v664_v8 = vmax.f32 %v604_v50, %v1986_v61  ;;  %v685_v9 = vrot.slane %v661_v62, 2  ;;  %v687_v10 = vrot.slane %v663_v63, 2 }
 0x1f4   : > { %v834_v11 = vsel %vm817_vm11, %v802_v56, %v833_v3  ;;  %v871_v12 = vsel %vm813_vm9, %v806_v47, %v870_v4  ;;  %v816_v13 = vsel %vm815_vm10, %v794_v41, %v814_v5  ;;  %v858_v14 = vsel %vm813_vm9, %v802_v56, %v857_v6  ;;  %v2397_v3 = vld [vmem:[#allocation2 + $0x88] sm:$0xff]   ;;  %v2398_v4 = vld [vmem:[#allocation2 + $0xd0] sm:$0xff]   ;;  %v2400_v6 = vld [vmem:[#allocation2 + $0xd8] sm:$0xff]  }
 0x1f5   : > { %v686_v15 = vrot.slane %v662_v7, 2  ;;  %v688_v19 = vrot.slane %v664_v8, 2  ;;  %v709_v20 = vmax.f32 %v661_v62, %v685_v9  ;;  %v711_v22 = vmax.f32 %v663_v63, %v687_v10  ;;  %v2399_v5 = vld [vmem:[#allocation2 + $0x90] sm:$0xff]   ;;  %v2403_v9 = vld [vmem:[#allocation2 + $0xa0] sm:$0xff]   ;;  %v2404_v10 = vld [vmem:[#allocation2 + $0xe8] sm:$0xff]  }
 0x1f6   : > { %v835_v24 = vsel %vm819_vm12, %v806_v47, %v834_v11  ;;  %v872_v25 = vsel %vm815_vm10, %v810_v57, %v871_v12  ;;  %v818_v27 = vsel %vm817_vm11, %v798_v49, %v816_v13  ;;  %v859_v28 = vsel %vm815_vm10, %v806_v47, %v858_v14  ;;  %v2405_v11 = vld [vmem:[#allocation2 + $0xa8] sm:$0xff]   ;;  %v2406_v12 = vld [vmem:[#allocation2 + $0xf0] sm:$0xff]   ;;  %v2408_v14 = vld [vmem:[#allocation2 + $0xf8] sm:$0xff]  }
 0x1f7   : > { %v710_v30 = vmax.f32 %v662_v7, %v686_v15  ;;  %v712_v31 = vmax.f32 %v664_v8, %v688_v19  ;;  %v755_v32 = vadd.f32 %v3086_v23, %v709_v20  ;;  %v836_v33 = vsel %vm821_vm13, %v810_v57, %v835_v24  ;;  %v2401_v7 = vld [vmem:[#allocation2 + $0x98] sm:$0xff]   ;;  %v2402_v8 = vld [vmem:[#allocation2 + $0xe0] sm:$0xff]   ;;  %v2407_v13 = vld [vmem:[#allocation2 + $0xb0] sm:$0xff]  }
 0x1f8   : > { %v820_v35 = vsel %vm819_vm12, %v802_v56, %v818_v27  ;;  %v757_v36 = vadd.f32 %v3093_v29, %v711_v22  ;;  %v860_v37 = vsel %vm817_vm11, %v810_v57, %v859_v28  ;;  %v845_v38 = vsel %vm813_vm9, %v798_v49, %v844_v48  ;;  %v2395_v49 = vld [vmem:[#allocation2 + $0x80] sm:$0xff]   ;;  %v2409_v15 = vld [vmem:[#allocation2 + $0xb8] sm:$0xff]  }
 0x1f9   : > { %v758_v41 = vadd.f32 %v736_v40, %v712_v31  ;;  %v767_v42 = vmax.f32 %v755_v32, 0.0  ;;  %v822_v43 = vsel %vm821_vm13, %v806_v47, %v820_v35  ;;  %v756_v44 = vadd.f32 %v735_v39, %v710_v30 }
 0x1fa   : > { %v824_v45 = vsel %vm823_vm14, %v810_v57, %v822_v43  ;;  %v769_v0 = vmax.f32 %v757_v36, 0.0  ;;  %v846_v1 = vsel %vm815_vm10, %v802_v56, %v845_v38  ;;  %v2396_v56 = vld [vmem:[#allocation2 + $0xc8] sm:$0xff]  }
 0x1fb   : > { %v770_v26 = vmax.f32 %v758_v41, 0.0  ;;  %v830_v34 = vrot.slane %v767_v42, %v3073_v17  ;;  %v768_v46 = vmax.f32 %v756_v44, 0.0  ;;  %v847_v48 = vsel %vm817_vm11, %v806_v47, %v846_v1 }
 0x1fc   : > { %v878_v2 = vpack.c.bf16 %v824_v45, %v824_v45  ;;  %v856_v52 = vrot.slane %v769_v0, %v3073_v17  ;;  %v848_v50 = vsel %vm819_vm12, %v810_v57, %v847_v48 }
 0x1fd   : > { %v837_v29 = vsel %vm823_vm14, %v830_v34, %v836_v33  ;;  %v873_v40 = vsel %vm817_vm11, %v830_v34, %v872_v25  ;;  %v843_v53 = vrot.slane %v768_v46, %v3073_v17  ;;  %v861_v23 = vsel %vm819_vm12, %v830_v34, %v860_v37 }
 0x1fe   : > { %v879_v39 = vpack.c.bf16 %v837_v29, %v837_v29  ;;  %v869_v47 = vrot.slane %v770_v26, %v3073_v17  ;;  %v849_v58 = vsel %vm821_vm13, %v830_v34, %v848_v50  ;;  %v1363_v33 = vsub.s32 1, %v3070_v16 }
 0x1ff   : > { %v862_v51 = vsel %vm821_vm13, %v843_v53, %v861_v23  ;;  %v874_v55 = vsel %vm819_vm12, %v843_v53, %v873_v40  ;;  %v850_v61 = vsel %vm823_vm14, %v843_v53, %v849_v58 }
 0x200   : > { %1235 = vmatprep.mubr.bf16.mxu1 %v879_v39  ;;  %v863_v59 = vsel %vm823_vm14, %v856_v52, %v862_v51  ;;  %v875_v60 = vsel %vm821_vm13, %v856_v52, %v874_v55  ;;  %v880_v19 = vpack.c.bf16 %v850_v61, %v850_v61  ;;  %v1364_v37 = vrot.slane %v3078_v18, %v1363_v33  ;;  %v2419_v33 = vld [vmem:[#allocation5 + $0x20] sm:$0xff]  }
 0x201   : > { %1236 = vmatmul.mubr.bf16.vlgmr.msra.gmra.mrb[0].mxu1 %v878_v2  ;;  %v881_v62 = vpack.c.bf16 %v863_v59, %v863_v59  ;;  %v876_v57 = vsel %vm823_vm14, %v869_v47, %v875_v60 }
 0x202   : > { %2090 = vmatpush3.bf16.msra.mxu1 %v2395_v49  ;;  %v882_v63 = vpack.c.bf16 %v876_v57, %v876_v57  ;;  %v1372_v44 = vrot.slane %v1364_v37, %v3083_v21  ;;  %v2422_v37 = vld [vmem:[#allocation5 + $0x70] sm:$0xff]  }
 0x203   : > { %1275 = vmatprep.mubr.bf16.mxu1 %v881_v62  ;;  %2091 = vmatprep.subr.bf16.mxu1 %v2396_v56 }
 0x204   : > { %2177 = vmatmul.mubr.bf16.vlgmr.msra.gmra.mrb[8].mxu0 %v882_v63  ;;  %v1373_v26 = vcombine.high %v1372_v44, %v1372_v44  ;;  %v1374_v16 = vrot.slane %v1372_v44, 1 }
 0x205   : > { %2196 = vmatprep.mubr.msk.bf16.mxu0 %vm2640_vm7, %v2639_v54 }
 0x206   : > { %2092 = vmatpush3.bf16.msra.mxu1 %v2397_v3  ;;  %v1375_v39 = vrot.slane %v1373_v26, 1 }
 0x207   : > { %2093 = vmatprep.subr.bf16.mxu1 %v2398_v4 }
 0x20a   : > { %2094 = vmatpush3.bf16.msra.mxu1 %v2399_v5 }
 0x20b   : > { %2095 = vmatprep.subr.bf16.mxu1 %v2400_v6 }
 0x20e   : > { %2096 = vmatpush3.bf16.msra.mxu1 %v2401_v7 }
 0x20f   : > { %2097 = vmatprep.subr.bf16.mxu1 %v2402_v8 }
 0x212   : > { %2098 = vmatpush3.bf16.msra.mxu1 %v2403_v9 }
 0x213   : > { %2099 = vmatprep.subr.bf16.mxu1 %v2404_v10 }
 0x216   : > { %2100 = vmatpush3.bf16.msra.mxu1 %v2405_v11 }
 0x217   : > { %2101 = vmatprep.subr.bf16.mxu1 %v2406_v12 }
 0x21a   : > { %2102 = vmatpush3.bf16.msra.mxu1 %v2407_v13 }
 0x21b   : > { %2103 = vmatprep.subr.bf16.mxu1 %v2408_v14 }
 0x21e   : > { %2104 = vmatpush3.bf16.msra.mxu1 %v2409_v15 }
 0x221   : > { %1276 = vmatmul.mubr.bf16.vlgmr.msra.gmra.mrb[4].mxu1 %v880_v19  ;;  %v2410_v19 = vld [vmem:[#allocation5 + $0x40] sm:$0xff]  }
 0x222   : > { %2120 = vmatprep.subr.bf16.mxu1 %v2410_v19 }
 0x2d4   : > { %v2083_v20 = vpop.f32.mrb[0].mxu1 }
 0x2d5   : > { %v2084_v22 = vpop.f32.mrb[1].mxu1 }
 0x2d6   : > { %v2085_v24 = vadd.f32 %v2084_v22, %v2083_v20  ;;  %v2086_v25 = vpop.f32.mrb[2].mxu1  ;;  %v2411_v20 = vld [vmem:[#allocation5] sm:$0xff]   ;;  %v2412_v22 = vld [vmem:[#allocation5 + $0x48] sm:$0xff]  }
 0x2d7   : > { %v1317_v27 = vpop.f32.mrb[8].mxu0  ;;  %v2087_v28 = vpop.f32.mrb[3].mxu1  ;;  %2121 = vmatpush3.bf16.msra.mxu1 %v2411_v20 }
 0x2d8   : > { %v2178_v30 = vpop.f32.mrb[9].mxu0  ;;  %v2414_v28 = vld [vmem:[#allocation5 + $0x50] sm:$0xff]   ;;  %2122 = vmatprep.subr.bf16.mxu1 %v2412_v22 }
 0x2d9   : > { %v1320_v31 = vpop.f32.mrb[10].mxu0  ;;  %v2415_v30 = vld [vmem:[#allocation5 + $0x10] sm:$0xff]  }
 0x2da   : > { %v2179_v32 = vpop.f32.mrb[11].mxu0  ;;  %v2417_v31 = vld [vmem:[#allocation5 + $0x18] sm:$0xff]  }
 0x2db   : > { %v2418_v32 = vld [vmem:[#allocation5 + $0x60] sm:$0xff]  }
 0x2f4   : > { %v2105_v35 = vpop.f32.mrb[4].mxu1 }
 0x2f5   : > { %v2106_v36 = vpop.f32.mrb[5].mxu1 }
 0x2f6   : > { %v2107_v38 = vadd.f32 %v2106_v36, %v2105_v35  ;;  %v2108_v41 = vpop.f32.mrb[6].mxu1  ;;  %v2420_v35 = vld [vmem:[#allocation5 + $0x68] sm:$0xff]  }
 0x2f7   : > { %v2109_v42 = vpop.f32.mrb[7].mxu1  ;;  %v2421_v36 = vld [vmem:[#allocation5 + $0x28] sm:$0xff]   ;;  %v2424_v41 = vld [vmem:[#allocation5 + $0x78] sm:$0xff]  }
 0x2f8   : > { %v1278_v43 = vadd.f32 %v2107_v38, %v2085_v24  ;;  %v2423_v38 = vld [vmem:[#allocation5 + $0x30] sm:$0xff]   ;;  %v2425_v42 = vld [vmem:[#allocation5 + $0x38] sm:$0xff]  }
 0x2fa   : > { %v1318_v45 = vadd.f32 %v1317_v27, %v1278_v43  ;;  %v2413_v27 = vld [vmem:[#allocation5 + $0x8] sm:$0xff]  }
 0x2fb   : > { %2123 = vmatpush3.bf16.msra.mxu1 %v2413_v27 }
 0x2fc   : > { %v1324_v0 = vcombine.high %v1318_v45, %v1318_v45  ;;  %v1331_v1 = vrot.slane %v1318_v45, %v3083_v21  ;;  %2124 = vmatprep.subr.bf16.mxu1 %v2414_v28  ;;  %v1806_v28 = vrot.slane %v3078_v18, 4 }
 0x2fe   : > { %v1338_v34 = vrot.slane %v1324_v0, %v3083_v21  ;;  %v1339_v46 = vcombine.high %v1331_v1, %v1331_v1  ;;  %v2027_v48 = vrot.slane %v1331_v1, 9  ;;  %v2426_v0 = vld [vmem:[#allocation7] sm:$0xff]  }
 0x2ff   : > { %2125 = vmatpush3.bf16.msra.mxu1 %v2415_v30  ;;  %2181 = vmatpush3.bf16.msra.mxu0 %v2426_v0 }
 0x300   : > { %v2028_v29 = vrot.slane %v1339_v46, 9  ;;  %v1357_v40 = vmax.f32 %v1331_v1, %v2027_v48  ;;  %v1340_v53 = vcombine.high %v1338_v34, %v1338_v34  ;;  %v2029_v23 = vrot.slane %v1338_v34, 9  ;;  %2182 = vmatprep.subr.bf16.mxu0 %v2639_v54 }
 0x302   : > { %v1358_v2 = vmax.f32 %v1339_v46, %v2028_v29  ;;  %v1380_v49 = vadd.f32 %v1372_v44, %v1357_v40  ;;  %v2030_v52 = vrot.slane %v1340_v53, 9  ;;  %v1359_v50 = vmax.f32 %v1338_v34, %v2029_v23  ;;  %v2427_v46 = vld [vmem:[#allocation7 + $0x8] sm:$0xff]   ;;  %v2428_v40 = vld [vmem:[#allocation7 + $0x10] sm:$0xff]   ;;  %v2430_v23 = vld [vmem:[#allocation7 + $0x20] sm:$0xff]  }
 0x303   : > { %2183 = vmatpush3.bf16.msra.mxu0 %v2427_v46 }
 0x304   : > { %v1381_v51 = vadd.f32 %v1374_v16, %v1358_v2  ;;  %v1360_v55 = vmax.f32 %v1340_v53, %v2030_v52  ;;  %v1382_v47 = vadd.f32 %v1373_v26, %v1359_v50  ;;  %v1384_v56 = vmax.f32 %v1380_v49, 0.0  ;;  %2184 = vmatprep.subr.bf16.mxu0 %v2639_v54  ;;  %v2429_v53 = vld [vmem:[#allocation7 + $0x18] sm:$0xff]  }
 0x306   : > { %v1385_v58 = vmax.f32 %v1381_v51, 0.0  ;;  %v1383_v59 = vadd.f32 %v1375_v39, %v1360_v55  ;;  %v1386_v21 = vmax.f32 %v1382_v47, 0.0  ;;  %v2431_v39 = vld [vmem:[#allocation7 + $0x28] sm:$0xff]  }
 0x307   : > { %2185 = vmatpush3.bf16.msra.mxu0 %v2428_v40 }
 0x308   : > { %v2355_v60 = vpack.i.bf16 %v1385_v58, %v1384_v56  ;;  %v1387_v61 = vmax.f32 %v1383_v59, 0.0  ;;  %2186 = vmatprep.subr.bf16.mxu0 %v2639_v54  ;;  %v2433_v59 = vld [vmem:[#allocation7 + $0x38] sm:$0xff]  }
 0x30a   : > { %2356 = vrot.lane.b32.xlu0 %v2355_v60, %s2642_s15  ;;  %v2360_v62 = vpack.i.bf16 %v1387_v61, %v1386_v21  ;;  %v2434_v60 = vld [vmem:[#allocation8] sm:$0xff]  }
 0x30b   : > { %2187 = vmatpush3.bf16.msra.mxu0 %v2429_v53 }
 0x30c   : > { %2361 = vrot.lane.b32.xlu1 %v2360_v62, %s2642_s15  ;;  %2188 = vmatprep.subr.bf16.mxu0 %v2639_v54  ;;  %v2437_v62 = vld [vmem:[#allocation8 + $0x18] sm:$0xff]  }
 0x30f   : > { %2189 = vmatpush3.bf16.msra.mxu0 %v2430_v23 }
 0x310   : > { %2190 = vmatprep.subr.bf16.mxu0 %v2639_v54 }
 0x313   : > { %2191 = vmatpush3.bf16.msra.mxu0 %v2431_v39 }
 0x314   : > { %2192 = vmatprep.subr.bf16.mxu0 %v2639_v54 }
 0x37c   : > { %v2357_v57 = vpop.permute.xlu0 %2356 }
 0x37d   : > { %v2359_v63 = vunpack.i.h.bf16 %v2357_v57  ;;  %v2358_v3 = vunpack.i.l.bf16 %v2357_v57  ;;  %v2438_v57 = vld [vmem:[#allocation8 + $0x20] sm:$0xff]  }
 0x37e   : > { %v2362_v4 = vpop.permute.xlu1 %2361 }
 0x37f   : > { %v1405_v5 = vmax.f32 %v1385_v58, %v2359_v63  ;;  %v1404_v6 = vmax.f32 %v1384_v56, %v2358_v3  ;;  %v2364_v7 = vunpack.i.h.bf16 %v2362_v4  ;;  %v2363_v8 = vunpack.i.l.bf16 %v2362_v4  ;;  %v2432_v58 = vld [vmem:[#allocation7 + $0x30] sm:$0xff]   ;;  %v2439_v63 = vld [vmem:[#allocation8 + $0x28] sm:$0xff]  }
 0x380   : > { %2193 = vmatpush3.bf16.msra.mxu0 %v2432_v58  ;;  %v1590_v4 = vrot.slane %v3078_v18, 2 }
 0x381   : > { %v1419_v9 = vrot.slane %v1405_v5, %v3073_v17  ;;  %v1415_v10 = vrot.slane %v1404_v6, %v3073_v17  ;;  %v1407_v11 = vmax.f32 %v1387_v61, %v2364_v7  ;;  %v1406_v12 = vmax.f32 %v1386_v21, %v2363_v8  ;;  %2194 = vmatprep.subr.bf16.mxu0 %v2639_v54  ;;  %v2435_v21 = vld [vmem:[#allocation8 + $0x8] sm:$0xff]   ;;  %v2436_v61 = vld [vmem:[#allocation8 + $0x10] sm:$0xff]  }
 0x383   : > { %v1427_v13 = vrot.slane %v1407_v11, %v3073_v17  ;;  %v1423_v14 = vrot.slane %v1406_v12, %v3073_v17  ;;  %v1428_v15 = vsel %vm811_vm8, %v1419_v9, %v1415_v10  ;;  %v2416_v17 = vld [vmem:[#allocation5 + $0x58] sm:$0xff]   ;;  %v2440_v12 = vld [vmem:[#allocation8 + $0x30] sm:$0xff]  }
 0x384   : > { %2126 = vmatprep.subr.bf16.mxu1 %v2416_v17  ;;  %2195 = vmatpush3.bf16.msra.mxu0 %v2433_v59 }
 0x385   : > { %v1429_v24 = vsel %vm813_vm9, %v1423_v14, %v1428_v15  ;;  %2127 = vmatpush3.bf16.msra.mxu1 %v2417_v31  ;;  %v1698_v14 = vrot.slane %v3078_v18, 3 }
 0x386   : > { %v1430_v25 = vsel %vm815_vm10, %v1427_v13, %v1429_v24  ;;  %2128 = vmatprep.subr.bf16.mxu1 %v2418_v32  ;;  %v2441_v13 = vld [vmem:[#allocation8 + $0x38] sm:$0xff]  }
 0x387   : > { %1435 = vrot.lane.b32.xlu1 %v1430_v25, %s2636_s18  ;;  %1432 = vrot.lane.b32.xlu0 %v1430_v25, %s2642_s15  ;;  %s328_s18 = sand.u32 1, %s2620_s25  }
 0x388   : > { %s329_s26 = scalar_lea.vmem [#allocation10], %s328_s18  ;;  %s1850_s22 = scalar_lea.sflag [#allocation4], %s328_s18 }
 0x389   : > { %2129 = vmatpush3.bf16.msra.mxu1 %v2419_v33  ;;  %s1862_s13 = sshll.u32 %s329_s26, 4  ;;  %s3220_s13 = int_to_ptr.vmem [resolvable:$true] %s1862_s13 }
 0x38a   : > { %2130 = vmatprep.subr.bf16.mxu1 %v2420_v35  ;;  %p2561_p6 = scmp.lt.s32.totalorder %s3220_s13, %s2559_s23 }
 0x38b   : > { %1438 = vrot.lane.b32.xlu0 %v1430_v25, %s2643_s20 }
 0x38d   : > { %2131 = vmatpush3.bf16.msra.mxu1 %v2421_v36 }
 0x38e   : > { %2132 = vmatprep.subr.bf16.mxu1 %v2422_v37 }
 0x391   : > { %2133 = vmatpush3.bf16.msra.mxu1 %v2423_v38 }
 0x392   : > { %2134 = vmatprep.subr.bf16.mxu1 %v2424_v41 }
 0x395   : > { %2135 = vmatpush3.bf16.msra.mxu1 %v2425_v42 }
 0x396   : > { %2200 = vmatprep.subr.bf16.mxu1 %v2639_v54 }
 0x3f9   : > { %v1433_v43 = vpop.permute.xlu0 %1432  ;;  %v1436_v44 = vpop.permute.xlu1 %1435 }
 0x3fa   : > { %v1442_v45 = vsel %vm1441_vm15, %v1430_v25, %v1433_v43 }
 0x3fb   : > { %v1443_v1 = vsel %vm404_vm4, %v1442_v45, %v1436_v44 }
 0x3fd   : > { %v1439_v26 = vpop.permute.xlu0 %1438 }
 0x3fe   : > { %v1445_v34 = vsel %vm1444_vm0, %v1443_v1, %v1439_v26 }
 0x3ff   : > { %v1447_v48 = vrot.slane %v1445_v34, 1  ;;  %v1453_v16 = vrot.slane %v1445_v34, 3  ;;  %v1451_v49 = vrot.slane %v1445_v34, 2 }
 0x401   : > { %v2365_v29 = vpack.i.bf16 %v1447_v48, %v1453_v16 }
 0x403   : > { %2366 = vrot.lane.b32.xlu1 %v2365_v29, %s2638_s14  ;;  %s2063_s14 = sshll.u32 %s2706_s28, 4  ;;  %s2554_s28 = scalar_lea.vmem %s3220_s13, 16 }
 0x404   : > { %s3218_s21 = scalar_lea.hbm %s3267_s7, %s2063_s14  ;;  %p2555_p8 = scmp.ne.s32.totalorder %s3220_s13, %s2554_s28 }
 0x405   : > { %p2562_p9 = scmp.lt.s32.totalorder %s2560_s30, %s2554_s28 }
 0x406   : > { %p2556_p13 = pnand %p2555_p8, %p3289_p11 }
 0x407   : > { %p2563_p5 = por %p2562_p9, %p2561_p6 }
 0x408   : > { %p2557_p1 = pneg %p2556_p13 }
 0x40a   : > { %p2564_p0 = pnand %p2563_p5, %p2557_p1 }
 0x475   : > { %v2367_v2 = vpop.permute.xlu1 %2366 }
 0x476   : > { %v2369_v52 = vunpack.i.h.bf16 %v2367_v2  ;;  %v2368_v50 = vunpack.i.l.bf16 %v2367_v2 }
 0x478   : > { %v1457_v51 = vsel %vm408_vm5, %v1445_v34, %v2369_v52  ;;  %v1458_v55 = vsel %vm408_vm5, %v1451_v49, %v2368_v50 }
 0x479   : > { %v1459_v47 = vpack.c.bf16 %v1457_v51, %v1457_v51  ;;  %v1460_v56 = vpack.c.bf16 %v1458_v55, %v1458_v55 }
 0x47b   : > { %1624 = vmatprep.mubr.bf16.mxu1 %v1460_v56 }
 0x47c   : > { %1625 = vmatmul.mubr.bf16.vlgmr.msra.gmra.mrb[8].mxu1 %v1459_v47 }
 0x47d   : > { %2216 = vmatprep.mubr.msk.bf16.mxu1 %vm2640_vm7, %v2639_v54  ;;  %2201 = vmatpush3.bf16.msra.mxu1 %v2434_v60 }
 0x47e   : > { %2202 = vmatprep.subr.bf16.mxu1 %v2639_v54 }
 0x481   : > { %2203 = vmatpush3.bf16.msra.mxu1 %v2435_v21 }
 0x482   : > { %2204 = vmatprep.subr.bf16.mxu1 %v2639_v54 }
 0x485   : > { %2205 = vmatpush3.bf16.msra.mxu1 %v2436_v61 }
 0x486   : > { %2206 = vmatprep.subr.bf16.mxu1 %v2639_v54 }
 0x489   : > { %2207 = vmatpush3.bf16.msra.mxu1 %v2437_v62 }
 0x48a   : > { %2208 = vmatprep.subr.bf16.mxu1 %v2639_v54 }
 0x48d   : > { %2209 = vmatpush3.bf16.msra.mxu1 %v2438_v57 }
 0x48e   : > { %2210 = vmatprep.subr.bf16.mxu1 %v2639_v54 }
 0x491   : > { %2211 = vmatpush3.bf16.msra.mxu1 %v2439_v63 }
 0x492   : > { %2212 = vmatprep.subr.bf16.mxu1 %v2639_v54 }
 0x495   : > { %2213 = vmatpush3.bf16.msra.mxu1 %v2440_v12 }
 0x496   : > { %2214 = vmatprep.subr.bf16.mxu1 %v2639_v54 }
 0x499   : > { %2215 = vmatpush3.bf16.msra.mxu1 %v2441_v13 }
 0x54f   : > { %v2136_v3 = vpop.f32.mrb[8].mxu1 }
 0x550   : > { %v2137_v5 = vpop.f32.mrb[9].mxu1 }
 0x551   : > { %v2138_v6 = vadd.f32 %v2137_v5, %v2136_v3  ;;  %v2139_v7 = vpop.f32.mrb[10].mxu1 }
 0x552   : > { %v2140_v8 = vpop.f32.mrb[11].mxu1 }
 0x553   : > { %v1627_v9 = vadd.f32 %v2138_v6, %v1590_v4 }
 0x555   : > { %v1632_v10 = vmax.f32 %v1627_v9, 0.0 }
 0x557   : > { %v1633_v11 = vpack.c.bf16 %v1632_v10, %v1632_v10 }
 0x559   : > { %2197 = vmatmul.mubr.bf16.vlgmr.msra.gmra.mrb[12].mxu0 %v1633_v11 }
 0x62c   : > { %v1734_v15 = vpop.f32.mrb[12].mxu0 }
 0x62d   : > { %v1735_v19 = vadd.f32 %v1734_v15, %v1698_v14  ;;  %v2198_v20 = vpop.f32.mrb[13].mxu0 }
 0x62e   : > { %v1737_v22 = vpop.f32.mrb[14].mxu0 }
 0x62f   : > { %v1740_v24 = vmax.f32 %v1735_v19, 0.0  ;;  %v2199_v25 = vpop.f32.mrb[15].mxu0 }
 0x631   : > { %v1741_v27 = vpack.c.bf16 %v1740_v24, %v1740_v24 }
 0x633   : > { %2217 = vmatmul.mubr.bf16.vlgmr.msra.gmra.mrb[12].mxu1 %v1741_v27 }
 0x706   : > { %v1842_v54 = vpop.f32.mrb[12].mxu1 }
 0x707   : > { %v1843_v30 = vadd.f32 %v1842_v54, %v1806_v28  ;;  %v2218_v17 = vpop.f32.mrb[13].mxu1 }
 0x708   : > { %v1845_v31 = vpop.f32.mrb[14].mxu1 }
 0x709   : > { %1848 = vst [vmem:[%s329_s26] sm:$0x1] %v1843_v30  ;;  %v2219_v32 = vpop.f32.mrb[15].mxu1 }
 0x70a   : > { %2567 = shalt.err (!%p2564_p0)
}
 0x70b   : > { %s2568_s29 = scalar_lea.hbm %s3218_s21, 16  ;;  %s2572_s19 = scalar_lea.hbm %s3267_s7, 32 }
 0x70c   : > { %p2569_p10 = scmp.ne.s32.totalorder %s3218_s21, %s2568_s29  ;;  %p2573_p4 = scmp.lt.u32.totalorder %s3218_s21, %s3267_s7 }
 0x70d   : > { %p2574_p12 = scmp.lt.u32.totalorder %s2572_s19, %s2568_s29  ;;  %p2576_p8 = scmp.lt.u32.totalorder %s2568_s29, %s3218_s21 }
 0x70e   : > { %p2570_p2 = pnand %p2569_p10, %p3289_p11 }
 0x70f   : > { %p2575_p7 = por %p2574_p12, %p2573_p4 }
 0x710   : > { %p2571_p3 = pneg %p2570_p2 }
 0x711   : > { %p2577_p13 = por %p2576_p8, %p2575_p7 }
 0x713   : > { %p2578_p1 = pnand %p2577_p13, %p2571_p3 }
 0x715   : > { %2581 = shalt.err (!%p2578_p1)
}
 0x716   : > { %2276 = dma.vmem_to_hbm [thread:$0]  (%p3289_p11), %s3220_s13, 16, %s3218_s21, %s1850_s22  }
 0x717 PF: > { %p2303_p6 = scmp.ge.s32.totalorder %s2628_s27, 2  ;;  %s1874_s18 = sand.u32 1, %s2616_s24  }
 0x718   : > { %p3290_p9 = scmp.ne.s32.totalorder %s3278_s12, 0  ;;  %s1875_s14 = scalar_lea.sflag [#allocation4], %s1874_s18 }
 0x71a   : > { %p2292_p5 = pnand %p2303_p6, %p3290_p9 }
 0x71c   : > { %2611 = dma.done.wait (!%p2292_p5), %s1875_s14, 16  }
 0x71d   : > { %2613 = vsyncadd (!%p2292_p5), %s1875_s14, 4294967280  ;;  %s3291_s27 = sld [smem:[#allocation16_spill]]  ;;  %s3292_s26 = sld [smem:[#allocation15_spill]] }
 0x71e   : > { %s3293_s16 = sld [smem:[#allocation17_spill]]  ;;  %s3294_s24 = smov %s2620_s25 }
 0x723   : > { %p20_p0 = scmp.ge.s32.totalorder %s3291_s27, 4   ;;  %s3295_s25 = smov %s3292_s26 }
 0x724   : > { %s3296_s26 = smov %s3293_s16 }
 0x725   :  { %22 = sbr.rel (!%p20_p0) target bundleno = 6 (0x6), region = 100 }
 0x72c   :  { %1879 = vsyncpa [#allocation3], 1 }
 0x72d   :  { %1881 = vsyncpa [#allocation3 + $0x1], 1 }
 0x72e   :  { %1882 = vsyncpa [#allocation6], 1 }
 0x72f   :  { %1883 = vsyncpa [#allocation9], 1 }
 0x730   :  { %1884 = vsyncpa [#allocation4], 1 }
 0x731   :  { %1886 = vsyncpa [#allocation4 + $0x1], 1 }

</bundles_post_ra>
